<compile_context>
chip_gen: v7x
topology: tpu7x:2x2x1
jax: 0.10.0
libtpu: 0.0.40
codegen_flags: <defaults>
</compile_context>

<pallas_src>
import functools

import jax
import jax.numpy as jnp
from jax import lax
from jax.experimental import pallas as pl
from jax.experimental.pallas import tpu as pltpu


def _round_up(x, m):
    return (x + m - 1) // m * m


# ----------------------------------------------------------------------------
# Pallas kernel: one (batch, y-tile) block per grid step
# ----------------------------------------------------------------------------
def _rcell_kernel(xh_ref, w_ref, b_ref, c_ref, wout_ref, bout_ref, out_ref, *,
                  hidden, ksize, wp, r_out, out_w):
    # Load the halo block once; every conv tap is a static row-slice of it.
    xh = xh_ref[0]                                        # (R_blk, Cin+Ch) bf16

    # All k*k taps of both conv paths and all 4 gates accumulate into one
    # f32 register accumulator; each tap is one small weight-stationary MXU
    # pass (K = Cin+Ch, N = 4*Ch).  HBM traffic is ~1x the natural bytes.
    acc = jnp.zeros((r_out, 4 * hidden), jnp.float32)
    for dy in range(ksize):
        for dx in range(ksize):
            t = dy * ksize + dx
            off = dy * wp + dx                            # static row offset
            acc = acc + jnp.dot(xh[off:off + r_out, :], w_ref[t],
                                preferred_element_type=jnp.float32)

    # Single full-width tanh over all four gates (LSTM_act == LSTM_c_act ==
    # tanh in this config), then slice: 1 EUP pass instead of 4 quarter-lane.
    gates = jnp.tanh(acc + b_ref[...])
    i_t = gates[:, 0 * hidden:1 * hidden]
    f_t = gates[:, 1 * hidden:2 * hidden]
    g_t = gates[:, 2 * hidden:3 * hidden]
    o_t = gates[:, 3 * hidden:4 * hidden]

    c_new = f_t * c_ref[0] + i_t * g_t
    h_new = o_t * jnp.tanh(c_new)

    # Fused 1x1 'out' conv + tanh epilogue (overlaps the next tile's DMA).
    r_new = jnp.tanh(jnp.dot(h_new.astype(wout_ref.dtype), wout_ref[...],
                             preferred_element_type=jnp.float32)
                     + bout_ref[...])

    # Assemble the lane-dense [ r | h | c | pad ] slab in registers and write
    # it with a single unmasked full-width store.
    pieces = [r_new, h_new, c_new]
    pad_w = out_w - 3 * hidden
    if pad_w > 0:
        pieces.append(jnp.zeros((r_out, pad_w), jnp.float32))
    out_ref[0] = jnp.concatenate(pieces, axis=-1)


# ----------------------------------------------------------------------------
# One-time weight packing (hoisted out of the per-timestep call)
# ----------------------------------------------------------------------------
def pack_rcell_params(params, kernel_size=3):
    """Fold the 8 conv weights into a single per-tap (k*k, Cin+Ch, 4*Ch) bf16
    tensor (+ fused biases, 1x1 out-conv weight).  Call once per model."""
    k = kernel_size
    Ch = params['Wxi'].shape[0]

    def taps(w):  # (Co, Ci, kh, kw) -> (kh*kw, Ci, Co)
        return jnp.transpose(w, (2, 3, 1, 0)).reshape(k * k, w.shape[1], w.shape[0])

    # Gate order [i | f | c | o] along output columns; x-channels then
    # h-channels along the contraction rows (matches the NHWC concat order).
    wx = jnp.concatenate([taps(params['Wxi']), taps(params['Wxf']),
                          taps(params['Wxc']), taps(params['Wxo'])], axis=-1)
    wh = jnp.concatenate([taps(params['Whi']), taps(params['Whf']),
                          taps(params['Whc']), taps(params['Who'])], axis=-1)
    w_tap = jnp.concatenate([wx, wh], axis=1).astype(jnp.bfloat16)  # (kk, CC, 4Ch)

    b = jnp.concatenate([params['bxi'] + params['bhi'],
                         params['bxf'] + params['bhf'],
                         params['bxc'] + params['bhc'],
                         params['bxo'] + params['bho']]).reshape(1, 4 * Ch)
    wout = params['Wout'][:, :, 0, 0].T.astype(jnp.bfloat16)        # (Ci, Co)
    bout = params['bout'].reshape(1, Ch)
    return {'w_tap': w_tap, 'b': b.astype(jnp.float32),
            'wout': wout, 'bout': bout.astype(jnp.float32)}


# ----------------------------------------------------------------------------
# Wrapper
# ----------------------------------------------------------------------------
def _nearest_upsample_nchw(x, H, W):
    """PyTorch F.interpolate(mode='nearest') semantics: src = floor(dst*scale)."""
    H2, W2 = x.shape[2], x.shape[3]
    iy = (jnp.arange(H) * H2) // H
    ix = (jnp.arange(W) * W2) // W
    return x[:, :, iy, :][:, :, :, ix]


def _choose_ty(N, H, Wp, cc, ch, out_w, p):
    """Pick the y-tile height: as big as VMEM comfortably allows, preferring an
    even number of >= 8 grid steps (two v7x TensorCores x several steps)."""
    def tile_bytes(ty):       # double-buffered streamed operands per tile
        r_out = ty * Wp
        r_blk = _round_up((ty + 2 * p) * Wp + 2 * p, 16)
        return 2 * (r_blk * cc * 2 + r_out * ch * 4 + r_out * out_w * 4)

    divisors = [d for d in range(1, H + 1) if H % d == 0]
    fits = [d for d in divisors
            if tile_bytes(d) <= 12 * 1024 * 1024 and d * Wp <= 4096]
    if not fits:
        fits = [1]
    good = [d for d in fits if N * (H // d) >= 8 and (N * (H // d)) % 2 == 0]
    return max(good) if good else max(fits)


@jax.jit
def rcell_forward(E, R_lp1, H_tm1, C_tm1, packed):
    """Inputs / outputs in NCHW (matching the PyTorch module)."""
    w_tap, b, wout, bout = packed['w_tap'], packed['b'], packed['wout'], packed['bout']
    kk, CC, four_ch = w_tap.shape
    Ch = four_ch // 4
    k = int(round(kk ** 0.5))
    p = (k - 1) // 2
    N, _, H, W = E.shape
    Wp = W + 2 * p

    # is_last=False, no_ER=False branch
    R_up = _nearest_upsample_nchw(R_lp1, H, W)
    x_t = jnp.concatenate([E, R_up], axis=1)              # (N, Cin, H, W)
    assert x_t.shape[1] + Ch == CC
    # dropout_p = 0.0 -> identity
    # TODO(synk): dropout with p > 0 (training-mode RNG mask) not implemented.

    def to_nhwc(a):
        return jnp.transpose(a, (0, 2, 3, 1))

    # Concatenate x|h channels, cast to bf16 BEFORE any materialization, pad.
    xh = jnp.concatenate([to_nhwc(x_t), to_nhwc(H_tm1)],
                         axis=-1).astype(jnp.bfloat16)    # (N, H, W, CC)
    xh_pad = jnp.pad(xh, ((0, 0), (p, p), (p, p), (0, 0)))  # (N, H+2p, Wp, CC)

    out_w = _round_up(3 * Ch, 128)                        # lane-dense packed output
    ty = _choose_ty(N, H, Wp, CC, Ch, out_w, p)
    n_yt = H // ty
    n_tiles = N * n_yt
    R_out = ty * Wp                                       # rows per tile (x-pad rows discarded)
    R_blk = _round_up((ty + 2 * p) * Wp + 2 * p, 16)      # halo rows incl. tap overhang

    # y-halo tiling: ~(ty+2p)/ty bytes instead of 9x im2col amplification.
    row_idx = jnp.arange(n_yt)[:, None] * ty + jnp.arange(ty + 2 * p)[None, :]
    xh_tiles = xh_pad[:, row_idx]                         # (N, n_yt, ty+2p, Wp, CC)
    xh_tiles = xh_tiles.reshape(n_tiles, (ty + 2 * p) * Wp, CC)
    xh_tiles = jnp.pad(xh_tiles, ((0, 0), (0, R_blk - (ty + 2 * p) * Wp), (0, 0)))

    # C_{t-1} laid out in the same dense (y, x_padded) row space; the 2p junk
    # columns are computed through the gating and discarded afterwards.
    c_x = jnp.pad(to_nhwc(C_tm1).astype(jnp.float32),
                  ((0, 0), (0, 0), (0, 2 * p), (0, 0)))   # (N, H, Wp, Ch)
    c_tiles = c_x.reshape(N, n_yt, ty, Wp, Ch).reshape(n_tiles, R_out, Ch)

    kern = functools.partial(_rcell_kernel, hidden=Ch, ksize=k, wp=Wp,
                             r_out=R_out, out_w=out_w)

    # Note: for large hidden sizes the constant-index weight spec could use
    # pipeline_mode=pl.Buffered(1) (or a resident VMEM scratch) to avoid
    # double-buffering an invariant operand; at these sizes it is negligible.
    packed_out = pl.pallas_call(
        kern,
        out_shape=jax.ShapeDtypeStruct((n_tiles, R_out, out_w), jnp.float32),
        grid_spec=pltpu.PrefetchScalarGridSpec(
            num_scalar_prefetch=0,
            grid=(n_tiles,),
            in_specs=[
                pl.BlockSpec((1, R_blk, CC), lambda i: (i, 0, 0)),        # x|h halo block
                pl.BlockSpec((kk, CC, 4 * Ch), lambda i: (0, 0, 0)),      # per-tap weights
                pl.BlockSpec((1, 4 * Ch), lambda i: (0, 0)),              # gate biases
                pl.BlockSpec((1, R_out, Ch), lambda i: (i, 0, 0)),        # C_{t-1}
                pl.BlockSpec((Ch, Ch), lambda i: (0, 0)),                 # W_out (1x1)
                pl.BlockSpec((1, Ch), lambda i: (0, 0)),                  # b_out
            ],
            out_specs=pl.BlockSpec((1, R_out, out_w), lambda i: (i, 0, 0)),
        ),
        compiler_params=pltpu.CompilerParams(
            dimension_semantics=("parallel",),
            vmem_limit_bytes=32 * 1024 * 1024),
    )(xh_tiles, w_tap, b, c_tiles, wout, bout)

    # Un-tile, drop the x-pad columns, split the packed slab, back to NCHW.
    out5 = packed_out.reshape(N, n_yt, ty, Wp, out_w)[:, :, :, :W, :]
    out4 = out5.reshape(N, H, W, out_w)

    def to_nchw(a):
        return jnp.transpose(a, (0, 3, 1, 2))

    r = to_nchw(out4[..., 0 * Ch:1 * Ch])
    h = to_nchw(out4[..., 1 * Ch:2 * Ch])
    c = to_nchw(out4[..., 2 * Ch:3 * Ch])
    return r, (h, c)


# ----------------------------------------------------------------------------
# Pure-JAX reference (NCHW, lax.conv, f32) for correctness checking
# ----------------------------------------------------------------------------
def rcell_reference(E, R_lp1, H_tm1, C_tm1, params, kernel_size=3):
    N, _, H, W = E.shape
    k = kernel_size
    p = (k - 1) // 2
    R_up = _nearest_upsample_nchw(R_lp1, H, W)
    x_t = jnp.concatenate([E, R_up], axis=1)

    def conv(a, w, b, pad):
        a_pad = jnp.pad(a, ((0, 0), (0, 0), (pad, pad), (pad, pad)))
        out = lax.conv_general_dilated(
            a_pad, w, (1, 1), 'VALID',
            dimension_numbers=('NCHW', 'OIHW', 'NCHW'))
        return out + b[None, :, None, None]

    i_t = jnp.tanh(conv(x_t, params['Wxi'], params['bxi'], p)
                   + conv(H_tm1, params['Whi'], params['bhi'], p))
    f_t = jnp.tanh(conv(x_t, params['Wxf'], params['bxf'], p)
                   + conv(H_tm1, params['Whf'], params['bhf'], p))
    g_t = jnp.tanh(conv(x_t, params['Wxc'], params['bxc'], p)
                   + conv(H_tm1, params['Whc'], params['bhc'], p))
    C_t = f_t * C_tm1 + i_t * g_t
    o_t = jnp.tanh(conv(x_t, params['Wxo'], params['bxo'], p)
                   + conv(H_tm1, params['Who'], params['bho'], p))
    H_t = o_t * jnp.tanh(C_t)
    R_t = jnp.tanh(conv(H_t, params['Wout'], params['bout'], 0))
    return R_t, (H_t, C_t)


# ----------------------------------------------------------------------------
# Main
# ----------------------------------------------------------------------------
if __name__ == "__main__":
    # Small shapes consistent with the module:
    N = 2
    Ce = 8           # error-signal channels
    Cup = 8          # hidden channels of layer l+1 (R_lp1)
    Ch = 32          # hidden_channels
    Hs = Ws = 16     # spatial size of this layer
    k = 3

    key = jax.random.PRNGKey(0)
    keys = jax.random.split(key, 32)
    ki = iter(keys)

    def init(shape, scale=0.1):
        return scale * jax.random.normal(next(ki), shape, dtype=jnp.float32)

    params = {}
    for g in ("i", "f", "c", "o"):
        params[f"Wx{g}"] = init((Ch, Ce + Cup, k, k))
        params[f"bx{g}"] = init((Ch,))
        params[f"Wh{g}"] = init((Ch, Ch, k, k))
        params[f"bh{g}"] = init((Ch,))
    params["Wout"] = init((Ch, Ch, 1, 1))
    params["bout"] = init((Ch,))

    E = init((N, Ce, Hs, Ws), scale=1.0)
    R_lp1 = init((N, Cup, Hs // 2, Ws // 2), scale=1.0)
    H_tm1 = init((N, Ch, Hs, Ws), scale=1.0)
    C_tm1 = init((N, Ch, Hs, Ws), scale=1.0)

    # Weight packing is hoisted: done once per model, reused every timestep.
    packed_params = pack_rcell_params(params, kernel_size=k)

    R_t, (H_t, C_t) = jax.block_until_ready(
        rcell_forward(E, R_lp1, H_tm1, C_tm1, packed_params))

    R_r, (H_r, C_r) = jax.block_until_ready(
        rcell_reference(E, R_lp1, H_tm1, C_tm1, params, kernel_size=k))

    # Tolerance sized for bf16 MXU inputs (a few bf16 ulps at unit scale)
    # compared against the full-f32 reference.
    ATOL = RTOL = 4e-2
    for name, got, ref in (("R", R_t, R_r), ("H", H_t, H_r), ("C", C_t, C_r)):
        assert got.shape == ref.shape and got.dtype == ref.dtype
        if not jnp.allclose(got, ref, atol=ATOL, rtol=RTOL):
            err = float(jnp.max(jnp.abs(got - ref)))
            raise AssertionError(
                f"Pallas RCell {name} mismatch vs reference (max abs err {err:.4g})")

    print("KERNEL_OK")
</pallas_src>

<mosaic_0001>
module attributes {stable_mosaic.version = 11 : i64} {
  func.func @_rcell_kernel(%arg0: i32, %arg1: memref<1x112x48xbf16, #tpu.memory_space<vmem>>, %arg2: memref<9x48x128xbf16, #tpu.memory_space<vmem>>, %arg3: memref<1x128xf32, #tpu.memory_space<vmem>>, %arg4: memref<1x72x32xf32, #tpu.memory_space<vmem>>, %arg5: memref<32x32xbf16, #tpu.memory_space<vmem>>, %arg6: memref<1x32xf32, #tpu.memory_space<vmem>>, %arg7: memref<1x72x128xf32, #tpu.memory_space<vmem>>) attributes {dimension_semantics = [#tpu.dimension_semantics<parallel>], iteration_bounds = array<i64: 8>, scalar_prefetch = 0 : i64, scratch_operands = 0 : i64, tpu.core_type = #tpu.core_type<tc>, window_params = [{transform_indices = @transform_0, window_bounds = array<i64: 1, 112, 48>}, {pipeline_mode = #tpu.pipeline_mode<synchronous>, transform_indices = @transform_1, window_bounds = array<i64: 9, 48, 128>}, {pipeline_mode = #tpu.pipeline_mode<synchronous>, transform_indices = @transform_2, window_bounds = array<i64: 1, 128>}, {transform_indices = @transform_3, window_bounds = array<i64: 1, 72, 32>}, {pipeline_mode = #tpu.pipeline_mode<synchronous>, transform_indices = @transform_4, window_bounds = array<i64: 32, 32>}, {pipeline_mode = #tpu.pipeline_mode<synchronous>, transform_indices = @transform_5, window_bounds = array<i64: 1, 32>}, {transform_indices = @transform_6, window_bounds = array<i64: 1, 72, 128>}]} {
    %c0 = arith.constant 0 : index
    %c0_0 = arith.constant 0 : index
    %c0_1 = arith.constant 0 : index
    %0 = vector.load %arg1[%c0, %c0_0, %c0_1] : memref<1x112x48xbf16, #tpu.memory_space<vmem>>, vector<1x112x48xbf16>
    %1 = vector.shape_cast %0 : vector<1x112x48xbf16> to vector<112x48xbf16>
    %cst = arith.constant 0.000000e+00 : f32
    %2 = vector.broadcast %cst : f32 to vector<72x128xf32>
    %3 = vector.extract_strided_slice %1 {offsets = [0, 0], sizes = [72, 48], strides = [1, 1]} : vector<112x48xbf16> to vector<72x48xbf16>
    %c0_2 = arith.constant 0 : index
    %c0_3 = arith.constant 0 : index
    %c0_4 = arith.constant 0 : index
    %4 = vector.load %arg2[%c0_2, %c0_3, %c0_4] : memref<9x48x128xbf16, #tpu.memory_space<vmem>>, vector<1x48x128xbf16>
    %5 = vector.shape_cast %4 : vector<1x48x128xbf16> to vector<48x128xbf16>
    %cst_5 = arith.constant dense<0.000000e+00> : vector<72x128xf32>
    %6 = tpu.matmul %3, %5, %cst_5 {dimension_numbers = #tpu.dot_dimension_numbers<[1], [0], [0], [1], [0, 0, 1, 1], [], []>} : vector<72x48xbf16>, vector<48x128xbf16>, vector<72x128xf32> -> vector<72x128xf32>
    %7 = arith.addf %2, %6 : vector<72x128xf32>
    %8 = vector.extract_strided_slice %1 {offsets = [1, 0], sizes = [72, 48], strides = [1, 1]} : vector<112x48xbf16> to vector<72x48xbf16>
    %c1 = arith.constant 1 : index
    %c0_6 = arith.constant 0 : index
    %c0_7 = arith.constant 0 : index
    %9 = vector.load %arg2[%c1, %c0_6, %c0_7] : memref<9x48x128xbf16, #tpu.memory_space<vmem>>, vector<1x48x128xbf16>
    %10 = vector.shape_cast %9 : vector<1x48x128xbf16> to vector<48x128xbf16>
    %cst_8 = arith.constant dense<0.000000e+00> : vector<72x128xf32>
    %11 = tpu.matmul %8, %10, %cst_8 {dimension_numbers = #tpu.dot_dimension_numbers<[1], [0], [0], [1], [0, 0, 1, 1], [], []>} : vector<72x48xbf16>, vector<48x128xbf16>, vector<72x128xf32> -> vector<72x128xf32>
    %12 = arith.addf %7, %11 : vector<72x128xf32>
    %13 = vector.extract_strided_slice %1 {offsets = [2, 0], sizes = [72, 48], strides = [1, 1]} : vector<112x48xbf16> to vector<72x48xbf16>
    %c2 = arith.constant 2 : index
    %c0_9 = arith.constant 0 : index
    %c0_10 = arith.constant 0 : index
    %14 = vector.load %arg2[%c2, %c0_9, %c0_10] : memref<9x48x128xbf16, #tpu.memory_space<vmem>>, vector<1x48x128xbf16>
    %15 = vector.shape_cast %14 : vector<1x48x128xbf16> to vector<48x128xbf16>
    %cst_11 = arith.constant dense<0.000000e+00> : vector<72x128xf32>
    %16 = tpu.matmul %13, %15, %cst_11 {dimension_numbers = #tpu.dot_dimension_numbers<[1], [0], [0], [1], [0, 0, 1, 1], [], []>} : vector<72x48xbf16>, vector<48x128xbf16>, vector<72x128xf32> -> vector<72x128xf32>
    %17 = arith.addf %12, %16 : vector<72x128xf32>
    %18 = vector.extract_strided_slice %1 {offsets = [18, 0], sizes = [72, 48], strides = [1, 1]} : vector<112x48xbf16> to vector<72x48xbf16>
    %c3 = arith.constant 3 : index
    %c0_12 = arith.constant 0 : index
    %c0_13 = arith.constant 0 : index
    %19 = vector.load %arg2[%c3, %c0_12, %c0_13] : memref<9x48x128xbf16, #tpu.memory_space<vmem>>, vector<1x48x128xbf16>
    %20 = vector.shape_cast %19 : vector<1x48x128xbf16> to vector<48x128xbf16>
    %cst_14 = arith.constant dense<0.000000e+00> : vector<72x128xf32>
    %21 = tpu.matmul %18, %20, %cst_14 {dimension_numbers = #tpu.dot_dimension_numbers<[1], [0], [0], [1], [0, 0, 1, 1], [], []>} : vector<72x48xbf16>, vector<48x128xbf16>, vector<72x128xf32> -> vector<72x128xf32>
    %22 = arith.addf %17, %21 : vector<72x128xf32>
    %23 = vector.extract_strided_slice %1 {offsets = [19, 0], sizes = [72, 48], strides = [1, 1]} : vector<112x48xbf16> to vector<72x48xbf16>
    %c4 = arith.constant 4 : index
    %c0_15 = arith.constant 0 : index
    %c0_16 = arith.constant 0 : index
    %24 = vector.load %arg2[%c4, %c0_15, %c0_16] : memref<9x48x128xbf16, #tpu.memory_space<vmem>>, vector<1x48x128xbf16>
    %25 = vector.shape_cast %24 : vector<1x48x128xbf16> to vector<48x128xbf16>
    %cst_17 = arith.constant dense<0.000000e+00> : vector<72x128xf32>
    %26 = tpu.matmul %23, %25, %cst_17 {dimension_numbers = #tpu.dot_dimension_numbers<[1], [0], [0], [1], [0, 0, 1, 1], [], []>} : vector<72x48xbf16>, vector<48x128xbf16>, vector<72x128xf32> -> vector<72x128xf32>
    %27 = arith.addf %22, %26 : vector<72x128xf32>
    %28 = vector.extract_strided_slice %1 {offsets = [20, 0], sizes = [72, 48], strides = [1, 1]} : vector<112x48xbf16> to vector<72x48xbf16>
    %c5 = arith.constant 5 : index
    %c0_18 = arith.constant 0 : index
    %c0_19 = arith.constant 0 : index
    %29 = vector.load %arg2[%c5, %c0_18, %c0_19] : memref<9x48x128xbf16, #tpu.memory_space<vmem>>, vector<1x48x128xbf16>
    %30 = vector.shape_cast %29 : vector<1x48x128xbf16> to vector<48x128xbf16>
    %cst_20 = arith.constant dense<0.000000e+00> : vector<72x128xf32>
    %31 = tpu.matmul %28, %30, %cst_20 {dimension_numbers = #tpu.dot_dimension_numbers<[1], [0], [0], [1], [0, 0, 1, 1], [], []>} : vector<72x48xbf16>, vector<48x128xbf16>, vector<72x128xf32> -> vector<72x128xf32>
    %32 = arith.addf %27, %31 : vector<72x128xf32>
    %33 = vector.extract_strided_slice %1 {offsets = [36, 0], sizes = [72, 48], strides = [1, 1]} : vector<112x48xbf16> to vector<72x48xbf16>
    %c6 = arith.constant 6 : index
    %c0_21 = arith.constant 0 : index
    %c0_22 = arith.constant 0 : index
    %34 = vector.load %arg2[%c6, %c0_21, %c0_22] : memref<9x48x128xbf16, #tpu.memory_space<vmem>>, vector<1x48x128xbf16>
    %35 = vector.shape_cast %34 : vector<1x48x128xbf16> to vector<48x128xbf16>
    %cst_23 = arith.constant dense<0.000000e+00> : vector<72x128xf32>
    %36 = tpu.matmul %33, %35, %cst_23 {dimension_numbers = #tpu.dot_dimension_numbers<[1], [0], [0], [1], [0, 0, 1, 1], [], []>} : vector<72x48xbf16>, vector<48x128xbf16>, vector<72x128xf32> -> vector<72x128xf32>
    %37 = arith.addf %32, %36 : vector<72x128xf32>
    %38 = vector.extract_strided_slice %1 {offsets = [37, 0], sizes = [72, 48], strides = [1, 1]} : vector<112x48xbf16> to vector<72x48xbf16>
    %c7 = arith.constant 7 : index
    %c0_24 = arith.constant 0 : index
    %c0_25 = arith.constant 0 : index
    %39 = vector.load %arg2[%c7, %c0_24, %c0_25] : memref<9x48x128xbf16, #tpu.memory_space<vmem>>, vector<1x48x128xbf16>
    %40 = vector.shape_cast %39 : vector<1x48x128xbf16> to vector<48x128xbf16>
    %cst_26 = arith.constant dense<0.000000e+00> : vector<72x128xf32>
    %41 = tpu.matmul %38, %40, %cst_26 {dimension_numbers = #tpu.dot_dimension_numbers<[1], [0], [0], [1], [0, 0, 1, 1], [], []>} : vector<72x48xbf16>, vector<48x128xbf16>, vector<72x128xf32> -> vector<72x128xf32>
    %42 = arith.addf %37, %41 : vector<72x128xf32>
    %43 = vector.extract_strided_slice %1 {offsets = [38, 0], sizes = [72, 48], strides = [1, 1]} : vector<112x48xbf16> to vector<72x48xbf16>
    %c8 = arith.constant 8 : index
    %c0_27 = arith.constant 0 : index
    %c0_28 = arith.constant 0 : index
    %44 = vector.load %arg2[%c8, %c0_27, %c0_28] : memref<9x48x128xbf16, #tpu.memory_space<vmem>>, vector<1x48x128xbf16>
    %45 = vector.shape_cast %44 : vector<1x48x128xbf16> to vector<48x128xbf16>
    %cst_29 = arith.constant dense<0.000000e+00> : vector<72x128xf32>
    %46 = tpu.matmul %43, %45, %cst_29 {dimension_numbers = #tpu.dot_dimension_numbers<[1], [0], [0], [1], [0, 0, 1, 1], [], []>} : vector<72x48xbf16>, vector<48x128xbf16>, vector<72x128xf32> -> vector<72x128xf32>
    %47 = arith.addf %42, %46 : vector<72x128xf32>
    %c0_30 = arith.constant 0 : index
    %c0_31 = arith.constant 0 : index
    %48 = vector.load %arg3[%c0_30, %c0_31] : memref<1x128xf32, #tpu.memory_space<vmem>>, vector<1x128xf32>
    %49 = vector.broadcast %48 : vector<1x128xf32> to vector<72x128xf32>
    %50 = arith.addf %47, %49 : vector<72x128xf32>
    %51 = math.tanh %50 : vector<72x128xf32>
    %52 = vector.extract_strided_slice %51 {offsets = [0, 0], sizes = [72, 32], strides = [1, 1]} : vector<72x128xf32> to vector<72x32xf32>
    %53 = vector.extract_strided_slice %51 {offsets = [0, 32], sizes = [72, 32], strides = [1, 1]} : vector<72x128xf32> to vector<72x32xf32>
    %54 = vector.extract_strided_slice %51 {offsets = [0, 64], sizes = [72, 32], strides = [1, 1]} : vector<72x128xf32> to vector<72x32xf32>
    %55 = vector.extract_strided_slice %51 {offsets = [0, 96], sizes = [72, 32], strides = [1, 1]} : vector<72x128xf32> to vector<72x32xf32>
    %c0_32 = arith.constant 0 : index
    %c0_33 = arith.constant 0 : index
    %c0_34 = arith.constant 0 : index
    %56 = vector.load %arg4[%c0_32, %c0_33, %c0_34] : memref<1x72x32xf32, #tpu.memory_space<vmem>>, vector<1x72x32xf32>
    %57 = vector.shape_cast %56 : vector<1x72x32xf32> to vector<72x32xf32>
    %58 = arith.mulf %53, %57 : vector<72x32xf32>
    %59 = arith.mulf %52, %54 : vector<72x32xf32>
    %60 = arith.addf %58, %59 : vector<72x32xf32>
    %61 = math.tanh %60 : vector<72x32xf32>
    %62 = arith.mulf %55, %61 : vector<72x32xf32>
    %63 = arith.truncf %62 : vector<72x32xf32> to vector<72x32xbf16>
    %c0_35 = arith.constant 0 : index
    %c0_36 = arith.constant 0 : index
    %64 = vector.load %arg5[%c0_35, %c0_36] : memref<32x32xbf16, #tpu.memory_space<vmem>>, vector<32x32xbf16>
    %cst_37 = arith.constant dense<0.000000e+00> : vector<72x32xf32>
    %65 = tpu.matmul %63, %64, %cst_37 {dimension_numbers = #tpu.dot_dimension_numbers<[1], [0], [0], [1], [0, 0, 1, 1], [], []>} : vector<72x32xbf16>, vector<32x32xbf16>, vector<72x32xf32> -> vector<72x32xf32>
    %c0_38 = arith.constant 0 : index
    %c0_39 = arith.constant 0 : index
    %66 = vector.load %arg6[%c0_38, %c0_39] : memref<1x32xf32, #tpu.memory_space<vmem>>, vector<1x32xf32>
    %67 = vector.broadcast %66 : vector<1x32xf32> to vector<72x32xf32>
    %68 = arith.addf %65, %67 : vector<72x32xf32>
    %69 = math.tanh %68 : vector<72x32xf32>
    %cst_40 = arith.constant 0.000000e+00 : f32
    %70 = vector.broadcast %cst_40 : f32 to vector<72x32xf32>
    %71 = tpu.concatenate %69, %62, %60, %70 in 1 : vector<72x32xf32>, vector<72x32xf32>, vector<72x32xf32>, vector<72x32xf32> -> vector<72x128xf32>
    %c0_41 = arith.constant 0 : index
    %c0_42 = arith.constant 0 : index
    %c0_43 = arith.constant 0 : index
    %72 = vector.load %arg7[%c0_41, %c0_42, %c0_43] : memref<1x72x128xf32, #tpu.memory_space<vmem>>, vector<1x72x128xf32>
    %73 = vector.shape_cast %72 : vector<1x72x128xf32> to vector<72x128xf32>
    %74 = vector.shape_cast %71 : vector<72x128xf32> to vector<1x72x128xf32>
    tpu.vector_store %arg7[%c0_41, %c0_42, %c0_43], %74 {strides = array<i32>} : memref<1x72x128xf32, #tpu.memory_space<vmem>>, vector<1x72x128xf32>,
    return
  }
  func.func @transform_0(%arg0: i32) -> (i32, i32, i32) {
    %c0_i32 = arith.constant 0 : i32
    %c0_i32_0 = arith.constant 0 : i32
    %c0_i32_1 = arith.constant 0 : i32
    return %arg0, %c0_i32, %c0_i32_0 : i32, i32, i32
  }
  func.func @transform_1(%arg0: i32) -> (i32, i32, i32) {
    %c0_i32 = arith.constant 0 : i32
    %c0_i32_0 = arith.constant 0 : i32
    %c0_i32_1 = arith.constant 0 : i32
    %c0_i32_2 = arith.constant 0 : i32
    return %c0_i32, %c0_i32_0, %c0_i32_1 : i32, i32, i32
  }
  func.func @transform_2(%arg0: i32) -> (i32, i32) {
    %c0_i32 = arith.constant 0 : i32
    %c0_i32_0 = arith.constant 0 : i32
    %c0_i32_1 = arith.constant 0 : i32
    return %c0_i32, %c0_i32_0 : i32, i32
  }
  func.func @transform_3(%arg0: i32) -> (i32, i32, i32) {
    %c0_i32 = arith.constant 0 : i32
    %c0_i32_0 = arith.constant 0 : i32
    %c0_i32_1 = arith.constant 0 : i32
    return %arg0, %c0_i32, %c0_i32_0 : i32, i32, i32
  }
  func.func @transform_4(%arg0: i32) -> (i32, i32) {
    %c0_i32 = arith.constant 0 : i32
    %c0_i32_0 = arith.constant 0 : i32
    %c0_i32_1 = arith.constant 0 : i32
    return %c0_i32, %c0_i32_0 : i32, i32
  }
  func.func @transform_5(%arg0: i32) -> (i32, i32) {
    %c0_i32 = arith.constant 0 : i32
    %c0_i32_0 = arith.constant 0 : i32
    %c0_i32_1 = arith.constant 0 : i32
    return %c0_i32, %c0_i32_0 : i32, i32
  }
  func.func @transform_6(%arg0: i32) -> (i32, i32, i32) {
    %c0_i32 = arith.constant 0 : i32
    %c0_i32_0 = arith.constant 0 : i32
    %c0_i32_1 = arith.constant 0 : i32
    return %arg0, %c0_i32, %c0_i32_0 : i32, i32, i32
  }
}

</mosaic_0001>

<bundles_post_ra>
// kernel: rcell_forward.1
= control target key start
LH: loop header
LB: loop body
LE: loop exit
PB: predicated region body
PF: predicated region fallthrough
CT: control target
= control target key end

     0   :  { %s2672_s21 = smov 0   ;;  %s3375_s0 = inlined_call_operand.vmem [shape: bf16[8,112,48], index: 0, kind: input, shape index: {}]   ;;  %s3376_s1 = inlined_call_operand.vmem [shape: bf16[9,48,128], index: 1, kind: input, shape index: {}]   ;;  %s3377_s2 = inlined_call_operand.vmem [shape: f32[1,128], index: 2, kind: input, shape index: {}]   ;;  %s3378_s3 = inlined_call_operand.vmem [shape: f32[8,72,32], index: 3, kind: input, shape index: {}]   ;;  %s3379_s4 = inlined_call_operand.vmem [shape: bf16[32,32], index: 4, kind: input, shape index: {}]   ;;  %s3380_s5 = inlined_call_operand.vmem [shape: f32[1,32], index: 5, kind: input, shape index: {}]   ;;  %s3381_s6 = inlined_call_operand.vmem [shape: f32[8,72,128], index: 6, kind: output, shape index: {}]  }
   0x1 LB: > { %s2036_s22 = sadd.s32 4294967295, %s2631_s21   ;;  %p2040_p0 = scmp.ge.s32.totalorder %s2631_s21, 1  ;;  %s2631_s21 = sphi %s2672_s21, %s16_s21  }
   0x2   : > { %p222_p1 = scmp.lt.s32.totalorder %s2631_s21, 9 }
   0x4   : > { %p223_p2 = pnand %p2040_p0, %p222_p1 }
   0x5   : > { %v2534_v0 = vld [vmem:[%s3376_s1 + $0x18] sm:$0xff] (!%p223_p2)   ;;  %v2633_v1 = vmov (!%p223_p2), 0.0   ;;  %v2535_v2 = vld [vmem:[%s3376_s1] sm:$0xff] (!%p223_p2)   ;;  %vm2634_vm0 = vmmov (!%p223_p2), 0   ;;  %p257_p3 = scmp.lt.s32.totalorder (!%p223_p2), %s2036_s22, 7  ;;  %v2537_v4 = vld [vmem:[%s3376_s1 + $0x8] sm:$0xff] (!%p223_p2)  }
   0x6   : > { %226 = sbr.rel (%p223_p2) target bundleno = 1156 (0x484), region = 44  ;;  %2262 = vmatprep.subr.bf16.mxu0 (!%p223_p2), %v2633_v1  ;;  %2288 = vmatprep.subr.bf16.mxu1 (!%p223_p2), %v2633_v1  ;;  %v2536_v3 = vld [vmem:[%s3376_s1 + $0x20] sm:$0xff] (!%p223_p2)   ;;  %v2538_v5 = vld [vmem:[%s3376_s1 + $0x28] sm:$0xff] (!%p223_p2)   ;;  %v2539_v6 = vld [vmem:[%s3376_s1 + $0x10] sm:$0xff] (!%p223_p2)   ;;  %vm383_vm1 = vcmask (!%p223_p2), 392192   ;;  %vm976_vm3 = vcmask (!%p223_p2), 1045504  }
   0x7   : > { %2263 = vmatpush3.bf16.msra.mxu0 (!%p223_p2), %v2534_v0  ;;  %2268 = vmatprep.mubr.msk.bf16.mxu0 (!%p223_p2), %vm2634_vm0, %v2633_v1  ;;  %vm325_vm2 = vsmask.f32 (!%p223_p2), 7424  ;;  %v2542_v18 = vld [vmem:[%s3376_s1 + $0x30] sm:$0xff] (!%p223_p2)   ;;  %v2548_v21 = vld [vmem:[%s3376_s1 + $0x48] sm:$0xff] (!%p223_p2)   ;;  %v2544_v28 = vld [vmem:[%s3376_s1 + $0x38] sm:$0xff] (!%p223_p2)   ;;  %vm1372_vm6 = vcmask (!%p223_p2), 1044480  }
   0x8   : > { %2289 = vmatpush3.bf16.msra.mxu1 (!%p223_p2), %v2535_v2  ;;  %2264 = vmatprep.subr.bf16.mxu0 (!%p223_p2), %v2633_v1  ;;  %v2550_v24 = vld [vmem:[%s3376_s1 + $0x50] sm:$0xff] (!%p223_p2)   ;;  %vm830_vm4 = vsmask.f32 (!%p223_p2), 6400  ;;  %v2551_v34 = vld [vmem:[%s3376_s1 + $0x58] sm:$0xff] (!%p223_p2)   ;;  %v2547_v36 = vld [vmem:[%s3376_s1 + $0x40] sm:$0xff] (!%p223_p2)   ;;  %vm580_vm7 = vcmask (!%p223_p2), 1046528  }
   0x9   : > { %2290 = vmatprep.subr.bf16.mxu1 (!%p223_p2), %v2633_v1  ;;  %2294 = vmatprep.mubr.msk.bf16.mxu1 (!%p223_p2), %vm2634_vm0, %v2633_v1  ;;  %vm1226_vm5 = vsmask.f32 (!%p223_p2), 5376  ;;  %s2635_s15 = smov (!%p223_p2), 64   ;;  %s2636_s20 = smov (!%p223_p2), 32   ;;  %vm1762_vm8 = vcmask (!%p223_p2), 261120   ;;  %vm1940_vm9 = vcmask (!%p223_p2), 523264  }
   0xa   : > { %vm1950_vm10 = vcmask (!%p223_p2), 785408  }
   0xb   : > { %2265 = vmatpush3.bf16.msra.mxu0 (!%p223_p2), %v2536_v3 }
   0xc   : > { %2291 = vmatpush3.bf16.msra.mxu1 (!%p223_p2), %v2537_v4  ;;  %2266 = vmatprep.subr.bf16.mxu0 (!%p223_p2), %v2633_v1 }
   0xd   : > { %s3383_s22 = smov (!%p257_p3, %s2036_s22), 7  ;;  %2292 = vmatprep.subr.bf16.mxu1 %v2633_v1 }
   0xe   : > { %s2520_s11 = smul.u32 56, %s3383_s22 }
   0xf   : > { %2267 = vmatpush3.bf16.msra.mxu0 %v2538_v5  ;;  %s2521_s16 = smul.u32 72, %s3383_s22 }
  0x10   : > { %s2714_s14 = scalar_lea.vmem %s3375_s0, %s2520_s11  ;;  %2293 = vmatpush3.bf16.msra.mxu1 %v2539_v6  ;;  %2314 = vmatprep.subr.bf16.mxu0 %v2633_v1 }
  0x11   : > { %v2717_v7 = vld [vmem:[%s2714_s14] sm:$0xff]   ;;  %v2720_v8 = vld [vmem:[%s2714_s14 + $0x8] sm:$0xff]   ;;  %v2724_v9 = vld [vmem:[%s2714_s14 + $0x10] sm:$0xff]   ;;  %2340 = vmatprep.subr.bf16.mxu1 %v2633_v1  ;;  %s3156_s19 = scalar_lea.vmem %s3378_s3, %s2521_s16  ;;  %s3324_s7 = scalar_lea.vmem %s3381_s6, %s2521_s16 }
  0x12   : > { %v327_v10 = vshrl.u32 %v2717_v7, 16  ;;  %v329_v11 = vshll.u32 %v2717_v7, 16  ;;  %v334_v12 = vshll.u32 %v2720_v8, 16  ;;  %v338_v13 = vshrl.u32 %v2720_v8, 16  ;;  %v2742_v20 = vld [vmem:[%s2714_s14 + $0x18] sm:$0xff]   ;;  %v2805_v49 = vld [vmem:[%s2714_s14 + $0x28] sm:$0xff]  }
  0x13   : > { %2295 = vmatmul.mubr.msk.bf16.vlgmr.msra.gmra.mrb[0].mxu1 %vm383_vm1, %v2717_v7  ;;  %v2739_v19 = vshll.u32 %v2724_v9, 16  ;;  %v2752_v26 = vld [vmem:[%s2714_s14 + $0x20] sm:$0xf]  ;;  %v282_v27 = vld [vmem:[%s2714_s14 + $0x24] sm:$0xf]  ;;  %v2764_v31 = vshll.u32 %v2742_v20, 16 }
  0x14   : > { %v331_v14 = vrot.slane %v329_v11, 1  ;;  %v336_v15 = vrot.slane %v334_v12, 1  ;;  %v832_v16 = vrot.slane %v334_v12, 2  ;;  %v831_v17 = vrot.slane %v338_v13, 1  ;;  %2298 = vmatprep.mubr.msk.bf16.mxu1 %vm2634_vm0, %v2633_v1  ;;  %2341 = vmatpush3.bf16.msra.mxu1 %v2548_v21 }
  0x15   : > { %2342 = vmatprep.subr.bf16.mxu1 %v2633_v1  ;;  %v344_v30 = vrot.slane %v2739_v19, 1  ;;  %v2768_v32 = vshrl.u32 %v2724_v9, 16  ;;  %v2771_v33 = vcombine.low %v2752_v26, %v282_v27  ;;  %v354_v35 = vshrl.u32 %v2742_v20, 16 }
  0x16   : > { %v332_v22 = vor.u32 %v331_v14, %v327_v10  ;;  %v833_v23 = vor.u32 %v832_v16, %v831_v17  ;;  %v340_v29 = vor.u32 %v338_v13, %v336_v15  ;;  %v352_v38 = vrot.slane %v2764_v31, 1 }
  0x17   : > { %v834_v39 = vrot.slane %v2768_v32, 1  ;;  %v2789_v40 = vshll.u32 %v2771_v33, 16  ;;  %v835_v41 = vrot.slane %v2739_v19, 2  ;;  %v348_v42 = vor.u32 %v2768_v32, %v344_v30 }
  0x18   : > { %v337_v25 = vsel %vm325_vm2, %v332_v22, %v336_v15  ;;  %2343 = vmatpush3.bf16.msra.mxu1 %v2550_v24  ;;  %v345_v37 = vsel %vm325_vm2, %v340_v29, %v344_v30  ;;  %v2795_v43 = vshrl.u32 %v2771_v33, 16  ;;  %v977_v44 = vrot.slane %v2720_v8, 2 }
  0x19   : > { %2269 = vmatmul.mubr.msk.bf16.vlgmr.msra.gmra.mrb[0].mxu0 %vm383_vm1, %v337_v25  ;;  %2344 = vmatprep.subr.bf16.mxu1 %v2633_v1  ;;  %v836_v45 = vor.u32 %v835_v41, %v834_v39  ;;  %v978_v46 = vrot.slane %v2724_v9, 2  ;;  %v838_v47 = vrot.slane %v354_v35, 1  ;;  %v839_v48 = vrot.slane %v2764_v31, 2  ;;  %v2860_v25 = vld [vmem:[%s2714_s14 + $0x30] sm:$0xff]  }
  0x1a   : > { %2315 = vmatpush3.bf16.msra.mxu0 %v2542_v18  ;;  %2272 = vmatprep.mubr.msk.bf16.mxu0 %vm2634_vm0, %v2633_v1  ;;  %v980_v50 = vrot.slane %v2742_v20, 2  ;;  %v842_v51 = vrot.slane %v2795_v43, 1  ;;  %v843_v52 = vrot.slane %v2789_v40, 2  ;;  %v982_v56 = vrot.slane %v2771_v33, 2 }
  0x1b   : > { %2316 = vmatprep.subr.bf16.mxu0 %v2633_v1  ;;  %2299 = vmatmul.mubr.msk.bf16.gmra.mrb[4].mxu1 %vm383_vm1, %v2720_v8  ;;  %v2812_v53 = vsel %vm830_vm4, %v833_v23, %v836_v45  ;;  %v2815_v54 = vsel %vm976_vm3, %v977_v44, %v978_v46  ;;  %v840_v55 = vor.u32 %v839_v48, %v838_v47  ;;  %v847_v59 = vshrl.u32 %v2805_v49, 16  ;;  %v2553_v48 = vld [vmem:[%s3376_s1 + $0x68] sm:$0xff]  }
  0x1c   : > { %2302 = vmatprep.mubr.msk.bf16.mxu1 %vm2634_vm0, %v2633_v1  ;;  %2345 = vmatpush3.bf16.msra.mxu1 %v2551_v34  ;;  %v2821_v57 = vsel %vm976_vm3, %v978_v46, %v980_v50  ;;  %v844_v58 = vor.u32 %v843_v52, %v842_v51  ;;  %v850_v60 = vshll.u32 %v2805_v49, 16  ;;  %v353_v61 = vsel %vm325_vm2, %v348_v42, %v352_v38  ;;  %v2556_v42 = vld [vmem:[%s3376_s1 + $0x78] sm:$0xff]  }
  0x1d   : > { %2392 = vmatprep.subr.bf16.mxu1 %v2633_v1  ;;  %v2829_v62 = vsel %vm830_vm4, %v836_v45, %v840_v55  ;;  %v2832_v63 = vsel %vm976_vm3, %v980_v50, %v982_v56  ;;  %v2835_v0 = vrot.slane %v2805_v49, 2  ;;  %v360_v2 = vrot.slane %v2789_v40, 1  ;;  %v2557_v45 = vld [vmem:[%s3376_s1 + $0x80] sm:$0xff]  }
  0x1e   : > { %2317 = vmatpush3.bf16.msra.mxu0 %v2544_v28  ;;  %v2839_v3 = vsel %vm830_vm4, %v840_v55, %v844_v58  ;;  %v849_v4 = vrot.slane %v847_v59, 1  ;;  %v852_v5 = vrot.slane %v850_v60, 2  ;;  %v356_v6 = vor.u32 %v354_v35, %v352_v38  ;;  %v2555_v55 = vld [vmem:[%s3376_s1 + $0x70] sm:$0xff]  }
  0x1f   : > { %2318 = vmatprep.subr.bf16.mxu0 %v2633_v1  ;;  %v2843_v10 = vsel %vm976_vm3, %v982_v56, %v2835_v0  ;;  %v1227_v12 = vrot.slane %v2768_v32, 2  ;;  %v1228_v13 = vrot.slane %v2739_v19, 3  ;;  %v1230_v14 = vrot.slane %v354_v35, 2 }
  0x20   : > { %v2845_v11 = vor.u32 %v852_v5, %v849_v4  ;;  %v1231_v15 = vrot.slane %v2764_v31, 3  ;;  %v1234_v16 = vrot.slane %v2795_v43, 2  ;;  %v1235_v17 = vrot.slane %v2789_v40, 3  ;;  %v2560_v4 = vld [vmem:[%s3376_s1 + $0x98] sm:$0xff]   ;;  %v2568_v5 = vld [vmem:[%s3376_s1 + $0xd0] sm:$0xff]  }
  0x21   : > { %2273 = vmatmul.mubr.msk.bf16.gmra.mrb[4].mxu0 %vm383_vm1, %v345_v37  ;;  %v1229_v21 = vor.u32 %v1228_v13, %v1227_v12  ;;  %v1238_v22 = vrot.slane %v847_v59, 2  ;;  %v1239_v23 = vrot.slane %v850_v60, 3  ;;  %v1112_v30 = vrot.slane %v2860_v25, 2 }
  0x22   : > { %2276 = vmatprep.mubr.msk.bf16.mxu0 %vm2634_vm0, %v2633_v1  ;;  %2319 = vmatpush3.bf16.msra.mxu0 %v2547_v36  ;;  %v2857_v18 = vsel %vm830_vm4, %v844_v58, %v2845_v11  ;;  %v1232_v19 = vor.u32 %v1231_v15, %v1230_v14  ;;  %v1236_v24 = vor.u32 %v1235_v17, %v1234_v16  ;;  %v1373_v36 = vrot.slane %v2724_v9, 3 }
  0x23   : > { %2366 = vmatprep.subr.bf16.mxu0 %v2633_v1  ;;  %2303 = vmatmul.mubr.msk.bf16.gmra.mrb[8].mxu1 %vm383_vm1, %v2724_v9  ;;  %v2864_v27 = vor.u32 %v1239_v23, %v1238_v22  ;;  %v361_v31 = vsel %vm325_vm2, %v356_v6, %v360_v2  ;;  %v2884_v34 = vsel %vm976_vm3, %v2835_v0, %v1112_v30  ;;  %v1374_v37 = vrot.slane %v2742_v20, 3 }
  0x24   : > { %2306 = vmatprep.mubr.msk.bf16.mxu1 %vm2634_vm0, %v2633_v1  ;;  %v2869_v28 = vsel %vm1226_vm5, %v1229_v21, %v1232_v19  ;;  %v2872_v29 = vsel %vm1226_vm5, %v1232_v19, %v1236_v24  ;;  %v2063_v35 = vcombine.low %v2752_v26, %v2752_v26  ;;  %v364_v39 = vor.u32 %v2795_v43, %v360_v2  ;;  %v2559_v2 = vld [vmem:[%s3376_s1 + $0x90] sm:$0xff]  }
  0x25   : > { %v2878_v32 = vsel %vm1226_vm5, %v1236_v24, %v2864_v27  ;;  %v2895_v38 = vsel %vm1372_vm6, %v1373_v36, %v1374_v37  ;;  %v584_v26 = vrot.slane %v2724_v9, 1  ;;  %v582_v40 = vrot.slane %v2720_v8, 1 }
  0x26   : > { %v581_v43 = vrot.slane %v2717_v7, 1  ;;  %v1376_v44 = vrot.slane %v2771_v33, 3  ;;  %v586_v9 = vrot.slane %v2742_v20, 1  ;;  %v2552_v7 = vld [vmem:[%s3376_s1 + $0x60] sm:$0xff]   ;;  %v1378_v50 = vrot.slane %v2805_v49, 3 }
  0x27   : > { %v585_v41 = vsel %vm580_vm7, %v582_v40, %v584_v26  ;;  %v588_v52 = vrot.slane %v2771_v33, 1  ;;  %v1380_v33 = vrot.slane %v2860_v25, 3  ;;  %v716_v59 = vrot.slane %v2805_v49, 1  ;;  %v2562_v49 = vld [vmem:[%s3376_s1 + $0xa8] sm:$0xff]  }
  0x28   : > { %v2913_v8 = vsel %vm1372_vm6, %v1374_v37, %v1376_v44  ;;  %v583_v46 = vsel %vm580_vm7, %v581_v43, %v582_v40  ;;  %v587_v47 = vsel %vm580_vm7, %v584_v26, %v586_v9  ;;  %v2941_v51 = vsel %vm1372_vm6, %v1376_v44, %v1378_v50 }
  0x29   : > { %2277 = vmatmul.mubr.msk.bf16.gmra.mrb[8].mxu0 %vm383_vm1, %v353_v61  ;;  %v589_v56 = vsel %vm580_vm7, %v586_v9, %v588_v52  ;;  %v2961_v58 = vsel %vm1372_vm6, %v1378_v50, %v1380_v33  ;;  %v717_v60 = vsel %vm580_vm7, %v588_v52, %v716_v59  ;;  %v2563_v61 = vld [vmem:[%s3376_s1 + $0xb0] sm:$0xff]  }
  0x2a   : > { %2280 = vmatprep.mubr.msk.bf16.mxu0 %vm2634_vm0, %v2633_v1 }
  0x2b   : > { %2307 = vmatmul.mubr.msk.bf16.gmra.mrb[12].mxu1 %vm383_vm1, %v2742_v20  ;;  %v2558_v20 = vld [vmem:[%s3376_s1 + $0x88] sm:$0xff]  }
  0x2c   : > { %2310 = vmatprep.mubr.msk.bf16.mxu1 %vm2634_vm0, %v2633_v1 }
  0x31   : > { %2281 = vmatmul.mubr.msk.bf16.gmra.mrb[12].mxu0 %vm383_vm1, %v361_v31 }
  0x32   : > { %2284 = vmatprep.mubr.msk.bf16.mxu0 %vm2634_vm0, %v2633_v1 }
  0x33   : > { %2311 = vmatmul.mubr.msk.bf16.gmra.mrb[16].mxu1 %vm383_vm1, %v2063_v35 }
  0x34   : > { %2346 = vmatprep.mubr.msk.bf16.mxu1 %vm2634_vm0, %v2633_v1 }
  0x39   : > { %2285 = vmatmul.mubr.msk.bf16.gmra.mrb[16].mxu0 %vm383_vm1, %v364_v39 }
  0x3a   : > { %2320 = vmatprep.mubr.msk.bf16.mxu0 %vm2634_vm0, %v2633_v1 }
  0x3b   : > { %2347 = vmatmul.mubr.msk.bf16.vlgmr.msra.gmra.mrb[20].mxu1 %vm383_vm1, %v585_v41 }
  0x3c   : > { %2350 = vmatprep.mubr.msk.bf16.mxu1 %vm2634_vm0, %v2633_v1  ;;  %2393 = vmatpush3.bf16.msra.mxu1 %v2556_v42 }
  0x3d   : > { %2394 = vmatprep.subr.bf16.mxu1 %v2633_v1 }
  0x40   : > { %2395 = vmatpush3.bf16.msra.mxu1 %v2557_v45 }
  0x41   : > { %2321 = vmatmul.mubr.msk.bf16.vlgmr.msra.gmra.mrb[20].mxu0 %vm383_vm1, %v583_v46  ;;  %2396 = vmatprep.subr.bf16.mxu1 %v2633_v1 }
  0x42   : > { %2367 = vmatpush3.bf16.msra.mxu0 %v2552_v7  ;;  %2324 = vmatprep.mubr.msk.bf16.mxu0 %vm2634_vm0, %v2633_v1 }
  0x43   : > { %2368 = vmatprep.subr.bf16.mxu0 %v2633_v1  ;;  %2351 = vmatmul.mubr.msk.bf16.gmra.mrb[24].mxu1 %vm383_vm1, %v587_v47 }
  0x44   : > { %2354 = vmatprep.mubr.msk.bf16.mxu1 %vm2634_vm0, %v2633_v1  ;;  %2397 = vmatpush3.bf16.msra.mxu1 %v2558_v20 }
  0x45   : > { %2444 = vmatprep.subr.bf16.mxu1 %v2633_v1 }
  0x46   : > { %2369 = vmatpush3.bf16.msra.mxu0 %v2553_v48 }
  0x47   : > { %2370 = vmatprep.subr.bf16.mxu0 %v2633_v1 }
  0x49   : > { %2325 = vmatmul.mubr.msk.bf16.gmra.mrb[24].mxu0 %vm383_vm1, %v585_v41 }
  0x4a   : > { %2328 = vmatprep.mubr.msk.bf16.mxu0 %vm2634_vm0, %v2633_v1  ;;  %2371 = vmatpush3.bf16.msra.mxu0 %v2555_v55 }
  0x4b   : > { %2418 = vmatprep.subr.bf16.mxu0 %v2633_v1  ;;  %2355 = vmatmul.mubr.msk.bf16.gmra.mrb[28].mxu1 %vm383_vm1, %v589_v56 }
  0x4c   : > { %2358 = vmatprep.mubr.msk.bf16.mxu1 %vm2634_vm0, %v2633_v1 }
  0x51   : > { %2329 = vmatmul.mubr.msk.bf16.gmra.mrb[28].mxu0 %vm383_vm1, %v587_v47 }
  0x52   : > { %2332 = vmatprep.mubr.msk.bf16.mxu0 %vm2634_vm0, %v2633_v1 }
  0x53   : > { %2359 = vmatmul.mubr.msk.bf16.gmra.mrb[32].mxu1 %vm383_vm1, %v717_v60 }
  0x54   : > { %2362 = vmatprep.mubr.msk.bf16.mxu1 %vm2634_vm0, %v2633_v1 }
  0x59   : > { %2333 = vmatmul.mubr.msk.bf16.gmra.mrb[32].mxu0 %vm383_vm1, %v589_v56 }
  0x5a   : > { %2336 = vmatprep.mubr.msk.bf16.mxu0 %vm2634_vm0, %v2633_v1 }
  0x5b   : > { %2363 = vmatmul.mubr.msk.bf16.gmra.mrb[36].mxu1 %vm383_vm1, %v716_v59 }
  0x5c   : > { %2398 = vmatprep.mubr.msk.bf16.mxu1 %vm2634_vm0, %v2633_v1 }
  0x61   : > { %2337 = vmatmul.mubr.msk.bf16.gmra.mrb[36].mxu0 %vm383_vm1, %v588_v52 }
  0x62   : > { %2372 = vmatprep.mubr.msk.bf16.mxu0 %vm2634_vm0, %v2633_v1 }
  0x63   : > { %2399 = vmatmul.mubr.msk.bf16.vlgmr.msra.gmra.mrb[40].mxu1 %vm383_vm1, %v2815_v54  ;;  %v2564_v54 = vld [vmem:[%s3376_s1 + $0xb8] sm:$0xff]  }
  0x64   : > { %2402 = vmatprep.mubr.msk.bf16.mxu1 %vm2634_vm0, %v2633_v1  ;;  %2445 = vmatpush3.bf16.msra.mxu1 %v2562_v49 }
  0x65   : > { %2446 = vmatprep.subr.bf16.mxu1 %v2633_v1 }
  0x68   : > { %2447 = vmatpush3.bf16.msra.mxu1 %v2563_v61 }
  0x69   : > { %2373 = vmatmul.mubr.msk.bf16.vlgmr.msra.gmra.mrb[40].mxu0 %vm383_vm1, %v2812_v53  ;;  %2448 = vmatprep.subr.bf16.mxu1 %v2633_v1  ;;  %v2561_v53 = vld [vmem:[%s3376_s1 + $0xa0] sm:$0xff]  }
  0x6a   : > { %2419 = vmatpush3.bf16.msra.mxu0 %v2559_v2  ;;  %2376 = vmatprep.mubr.msk.bf16.mxu0 %vm2634_vm0, %v2633_v1 }
  0x6b   : > { %2420 = vmatprep.subr.bf16.mxu0 %v2633_v1  ;;  %2403 = vmatmul.mubr.msk.bf16.gmra.mrb[44].mxu1 %vm383_vm1, %v2821_v57 }
  0x6c   : > { %2406 = vmatprep.mubr.msk.bf16.mxu1 %vm2634_vm0, %v2633_v1  ;;  %2449 = vmatpush3.bf16.msra.mxu1 %v2564_v54 }
  0x6d   : > { %2496 = vmatprep.subr.bf16.mxu1 %v2633_v1 }
  0x6e   : > { %2421 = vmatpush3.bf16.msra.mxu0 %v2560_v4 }
  0x6f   : > { %2422 = vmatprep.subr.bf16.mxu0 %v2633_v1 }
  0x71   : > { %2377 = vmatmul.mubr.msk.bf16.gmra.mrb[44].mxu0 %vm383_vm1, %v2829_v62  ;;  %v2565_v62 = vld [vmem:[%s3376_s1 + $0xc0] sm:$0xff]  }
  0x72   : > { %2380 = vmatprep.mubr.msk.bf16.mxu0 %vm2634_vm0, %v2633_v1  ;;  %2423 = vmatpush3.bf16.msra.mxu0 %v2561_v53 }
  0x73   : > { %2470 = vmatprep.subr.bf16.mxu0 %v2633_v1  ;;  %2407 = vmatmul.mubr.msk.bf16.gmra.mrb[48].mxu1 %vm383_vm1, %v2832_v63 }
  0x74   : > { %2410 = vmatprep.mubr.msk.bf16.mxu1 %vm2634_vm0, %v2633_v1 }
  0x79   : > { %2381 = vmatmul.mubr.msk.bf16.gmra.mrb[48].mxu0 %vm383_vm1, %v2839_v3  ;;  %v1243_v3 = vshrl.u32 %v2860_v25, 16 }
  0x7a   : > { %2384 = vmatprep.mubr.msk.bf16.mxu0 %vm2634_vm0, %v2633_v1 }
  0x7b   : > { %2411 = vmatmul.mubr.msk.bf16.gmra.mrb[52].mxu1 %vm383_vm1, %v2843_v10  ;;  %v1245_v6 = vrot.slane %v1243_v3, 2 }
  0x7c   : > { %2414 = vmatprep.mubr.msk.bf16.mxu1 %vm2634_vm0, %v2633_v1 }
  0x81   : > { %2385 = vmatmul.mubr.msk.bf16.gmra.mrb[52].mxu0 %vm383_vm1, %v2857_v18 }
  0x82   : > { %2388 = vmatprep.mubr.msk.bf16.mxu0 %vm2634_vm0, %v2633_v1 }
  0x83   : > { %2415 = vmatmul.mubr.msk.bf16.gmra.mrb[56].mxu1 %vm383_vm1, %v2835_v0  ;;  %v2566_v0 = vld [vmem:[%s3376_s1 + $0xc8] sm:$0xff]  }
  0x84   : > { %2450 = vmatprep.mubr.msk.bf16.mxu1 %vm2634_vm0, %v2633_v1 }
  0x89   : > { %2389 = vmatmul.mubr.msk.bf16.gmra.mrb[56].mxu0 %vm383_vm1, %v2845_v11 }
  0x8a   : > { %2424 = vmatprep.mubr.msk.bf16.mxu0 %vm2634_vm0, %v2633_v1 }
  0x8b   : > { %2451 = vmatmul.mubr.msk.bf16.vlgmr.msra.gmra.mrb[60].mxu1 %vm383_vm1, %v2869_v28 }
  0x8c   : > { %2454 = vmatprep.mubr.msk.bf16.mxu1 %vm2634_vm0, %v2633_v1 }
  0x91   : > { %2425 = vmatmul.mubr.msk.bf16.vlgmr.msra.gmra.mrb[60].mxu0 %vm383_vm1, %v2821_v57  ;;  %v1246_v57 = vshll.u32 %v2860_v25, 16 }
  0x92   : > { %2471 = vmatpush3.bf16.msra.mxu0 %v2565_v62  ;;  %2428 = vmatprep.mubr.msk.bf16.mxu0 %vm2634_vm0, %v2633_v1 }
  0x93   : > { %2472 = vmatprep.subr.bf16.mxu0 %v2633_v1  ;;  %2455 = vmatmul.mubr.msk.bf16.gmra.mrb[64].mxu1 %vm383_vm1, %v2872_v29  ;;  %v1248_v11 = vrot.slane %v1246_v57, 3 }
  0x94   : > { %2458 = vmatprep.mubr.msk.bf16.mxu1 %vm2634_vm0, %v2633_v1 }
  0x95   : > { %v1249_v12 = vor.u32 %v1248_v11, %v1245_v6 }
  0x96   : > { %2473 = vmatpush3.bf16.msra.mxu0 %v2566_v0 }
  0x97   : > { %2474 = vmatprep.subr.bf16.mxu0 %v2633_v1  ;;  %v1250_v13 = vsel %vm1226_vm5, %v2864_v27, %v1249_v12 }
  0x99   : > { %2429 = vmatmul.mubr.msk.bf16.gmra.mrb[64].mxu0 %vm383_vm1, %v2832_v63 }
  0x9a   : > { %2432 = vmatprep.mubr.msk.bf16.mxu0 %vm2634_vm0, %v2633_v1  ;;  %2475 = vmatpush3.bf16.msra.mxu0 %v2568_v5 }
  0x9b   : > { %2459 = vmatmul.mubr.msk.bf16.gmra.mrb[68].mxu1 %vm383_vm1, %v2878_v32 }
  0x9c   : > { %2462 = vmatprep.mubr.msk.bf16.mxu1 %vm2634_vm0, %v2633_v1 }
  0xa1   : > { %2433 = vmatmul.mubr.msk.bf16.gmra.mrb[68].mxu0 %vm383_vm1, %v2843_v10 }
  0xa2   : > { %2436 = vmatprep.mubr.msk.bf16.mxu0 %vm2634_vm0, %v2633_v1 }
  0xa3   : > { %2463 = vmatmul.mubr.msk.bf16.gmra.mrb[72].mxu1 %vm383_vm1, %v1250_v13 }
  0xa4   : > { %2466 = vmatprep.mubr.msk.bf16.mxu1 %vm2634_vm0, %v2633_v1 }
  0xa9   : > { %2437 = vmatmul.mubr.msk.bf16.gmra.mrb[72].mxu0 %vm383_vm1, %v2884_v34 }
  0xaa   : > { %2440 = vmatprep.mubr.msk.bf16.mxu0 %vm2634_vm0, %v2633_v1 }
  0xab   : > { %2467 = vmatmul.mubr.msk.bf16.gmra.mrb[76].mxu1 %vm383_vm1, %v1249_v12 }
  0xac   : > { %2500 = vmatprep.mubr.msk.bf16.mxu1 %vm2634_vm0, %v2633_v1 }
  0xb1   : > { %2441 = vmatmul.mubr.msk.bf16.gmra.mrb[76].mxu0 %vm383_vm1, %v1112_v30 }
  0xb2   : > { %2476 = vmatprep.mubr.msk.bf16.mxu0 %vm2634_vm0, %v2633_v1 }
  0xb9   : > { %2477 = vmatmul.mubr.msk.bf16.vlgmr.msra.gmra.mrb[80].mxu0 %vm383_vm1, %v2895_v38 }
  0xba   : > { %2480 = vmatprep.mubr.msk.bf16.mxu0 %vm2634_vm0, %v2633_v1 }
  0xc1   : > { %2481 = vmatmul.mubr.msk.bf16.gmra.mrb[84].mxu0 %vm383_vm1, %v2913_v8 }
  0xc2   : > { %2484 = vmatprep.mubr.msk.bf16.mxu0 %vm2634_vm0, %v2633_v1 }
  0xc9   : > { %2485 = vmatmul.mubr.msk.bf16.gmra.mrb[88].mxu0 %vm383_vm1, %v2941_v51 }
  0xca   : > { %2488 = vmatprep.mubr.msk.bf16.mxu0 %vm2634_vm0, %v2633_v1 }
  0xd1   : > { %2489 = vmatmul.mubr.msk.bf16.gmra.mrb[92].mxu0 %vm383_vm1, %v2961_v58 }
  0xd2   : > { %2492 = vmatprep.mubr.msk.bf16.mxu0 %vm2634_vm0, %v2633_v1 }
  0xd9   : > { %2493 = vmatmul.mubr.msk.bf16.gmra.mrb[96].mxu0 %vm383_vm1, %v1380_v33 }
  0xe6   : > { %v535_v63 = vpop.f32.mrb[0].mxu1 }
  0xe7   : > { %v2296_v10 = vpop.f32.mrb[1].mxu1 }
  0xe8   : > { %v538_v14 = vpop.f32.mrb[2].mxu1 }
  0xe9   : > { %v2297_v15 = vpop.f32.mrb[3].mxu1 }
  0xec   : > { %v433_v16 = vpop.f32.mrb[0].mxu0 }
  0xed   : > { %v536_v17 = vadd.f32 %v535_v63, %v433_v16  ;;  %v2270_v18 = vpop.f32.mrb[1].mxu0 }
  0xee   : > { %v436_v21 = vpop.f32.mrb[2].mxu0  ;;  %v543_v19 = vpop.f32.mrb[4].mxu1 }
  0xef   : > { %v539_v22 = vadd.f32 %v538_v14, %v436_v21  ;;  %v2271_v23 = vpop.f32.mrb[3].mxu0  ;;  %v2300_v24 = vpop.f32.mrb[5].mxu1 }
  0xf0   : > { %v546_v27 = vpop.f32.mrb[6].mxu1 }
  0xf1   : > { %v2301_v28 = vpop.f32.mrb[7].mxu1 }
  0xf4   : > { %v441_v29 = vpop.f32.mrb[4].mxu0 }
  0xf5   : > { %v544_v30 = vadd.f32 %v543_v19, %v441_v29  ;;  %v2274_v31 = vpop.f32.mrb[5].mxu0 }
  0xf6   : > { %v444_v25 = vpop.f32.mrb[6].mxu0  ;;  %v551_v35 = vpop.f32.mrb[8].mxu1 }
  0xf7   : > { %v547_v32 = vadd.f32 %v546_v27, %v444_v25  ;;  %v2275_v34 = vpop.f32.mrb[7].mxu0  ;;  %v2304_v36 = vpop.f32.mrb[9].mxu1 }
  0xf8   : > { %v554_v37 = vpop.f32.mrb[10].mxu1 }
  0xf9   : > { %v2305_v38 = vpop.f32.mrb[11].mxu1 }
  0xfc   : > { %v449_v39 = vpop.f32.mrb[8].mxu0 }
  0xfd   : > { %v552_v26 = vadd.f32 %v551_v35, %v449_v39  ;;  %v2278_v40 = vpop.f32.mrb[9].mxu0 }
  0xfe   : > { %v452_v41 = vpop.f32.mrb[10].mxu0  ;;  %v559_v44 = vpop.f32.mrb[12].mxu1 }
  0xff   : > { %v555_v42 = vadd.f32 %v554_v37, %v452_v41  ;;  %v2279_v43 = vpop.f32.mrb[11].mxu0  ;;  %v2308_v8 = vpop.f32.mrb[13].mxu1 }
 0x100   : > { %v562_v9 = vpop.f32.mrb[14].mxu1 }
 0x101   : > { %v2309_v45 = vpop.f32.mrb[15].mxu1 }
 0x104   : > { %v457_v46 = vpop.f32.mrb[12].mxu0 }
 0x105   : > { %v560_v7 = vadd.f32 %v559_v44, %v457_v46  ;;  %v2282_v47 = vpop.f32.mrb[13].mxu0 }
 0x106   : > { %v460_v20 = vpop.f32.mrb[14].mxu0  ;;  %v567_v51 = vpop.f32.mrb[16].mxu1 }
 0x107   : > { %v563_v48 = vadd.f32 %v562_v9, %v460_v20  ;;  %v2283_v50 = vpop.f32.mrb[15].mxu0  ;;  %v2312_v52 = vpop.f32.mrb[17].mxu1 }
 0x108   : > { %v570_v55 = vpop.f32.mrb[18].mxu1 }
 0x109   : > { %v2313_v56 = vpop.f32.mrb[19].mxu1 }
 0x10c   : > { %v465_v33 = vpop.f32.mrb[16].mxu0 }
 0x10d   : > { %v568_v58 = vadd.f32 %v567_v51, %v465_v33  ;;  %v2286_v59 = vpop.f32.mrb[17].mxu0 }
 0x10e   : > { %v468_v60 = vpop.f32.mrb[18].mxu0  ;;  %v776_v61 = vpop.f32.mrb[20].mxu1 }
 0x10f   : > { %v2287_v49 = vpop.f32.mrb[19].mxu0  ;;  %v2348_v2 = vpop.f32.mrb[21].mxu1 }
 0x110   : > { %v779_v54 = vpop.f32.mrb[22].mxu1 }
 0x111   : > { %v2349_v4 = vpop.f32.mrb[23].mxu1 }
 0x114   : > { %v657_v53 = vpop.f32.mrb[20].mxu0 }
 0x115   : > { %v695_v62 = vadd.f32 %v657_v53, %v536_v17  ;;  %v2322_v0 = vpop.f32.mrb[21].mxu0 }
 0x116   : > { %v660_v3 = vpop.f32.mrb[22].mxu0  ;;  %v784_v11 = vpop.f32.mrb[24].mxu1 }
 0x117   : > { %v696_v57 = vadd.f32 %v660_v3, %v539_v22  ;;  %v814_v5 = vadd.f32 %v776_v61, %v695_v62  ;;  %v2323_v6 = vpop.f32.mrb[23].mxu0  ;;  %v2352_v12 = vpop.f32.mrb[25].mxu1 }
 0x118   : > { %v787_v63 = vpop.f32.mrb[26].mxu1 }
 0x119   : > { %v815_v13 = vadd.f32 %v779_v54, %v696_v57  ;;  %v2353_v10 = vpop.f32.mrb[27].mxu1 }
 0x11c   : > { %v665_v14 = vpop.f32.mrb[24].mxu0 }
 0x11d   : > { %v697_v15 = vadd.f32 %v665_v14, %v544_v30  ;;  %v2326_v16 = vpop.f32.mrb[25].mxu0 }
 0x11e   : > { %v668_v18 = vpop.f32.mrb[26].mxu0  ;;  %v792_v24 = vpop.f32.mrb[28].mxu1 }
 0x11f   : > { %v698_v21 = vadd.f32 %v668_v18, %v547_v32  ;;  %v816_v23 = vadd.f32 %v784_v11, %v697_v15  ;;  %v2327_v19 = vpop.f32.mrb[27].mxu0  ;;  %v2356_v27 = vpop.f32.mrb[29].mxu1 }
 0x120   : > { %v795_v28 = vpop.f32.mrb[30].mxu1 }
 0x121   : > { %v817_v17 = vadd.f32 %v787_v63, %v698_v21  ;;  %v2357_v29 = vpop.f32.mrb[31].mxu1 }
 0x124   : > { %v673_v22 = vpop.f32.mrb[28].mxu0 }
 0x125   : > { %v699_v31 = vadd.f32 %v673_v22, %v552_v26  ;;  %v2330_v25 = vpop.f32.mrb[29].mxu0 }
 0x126   : > { %v676_v34 = vpop.f32.mrb[30].mxu0  ;;  %v800_v38 = vpop.f32.mrb[32].mxu1 }
 0x127   : > { %v700_v35 = vadd.f32 %v676_v34, %v555_v42  ;;  %v818_v36 = vadd.f32 %v792_v24, %v699_v31  ;;  %v2331_v37 = vpop.f32.mrb[31].mxu0  ;;  %v2360_v39 = vpop.f32.mrb[33].mxu1 }
 0x128   : > { %v803_v40 = vpop.f32.mrb[34].mxu1 }
 0x129   : > { %v819_v30 = vadd.f32 %v795_v28, %v700_v35  ;;  %v2361_v41 = vpop.f32.mrb[35].mxu1 }
 0x12c   : > { %v681_v32 = vpop.f32.mrb[32].mxu0 }
 0x12d   : > { %v701_v43 = vadd.f32 %v681_v32, %v560_v7  ;;  %v2334_v44 = vpop.f32.mrb[33].mxu0 }
 0x12e   : > { %v684_v8 = vpop.f32.mrb[34].mxu0  ;;  %v808_v47 = vpop.f32.mrb[36].mxu1 }
 0x12f   : > { %v702_v9 = vadd.f32 %v684_v8, %v563_v48  ;;  %v820_v45 = vadd.f32 %v800_v38, %v701_v43  ;;  %v2335_v46 = vpop.f32.mrb[35].mxu0  ;;  %v2364_v20 = vpop.f32.mrb[37].mxu1 }
 0x130   : > { %v811_v50 = vpop.f32.mrb[38].mxu1 }
 0x131   : > { %v821_v26 = vadd.f32 %v803_v40, %v702_v9  ;;  %v2365_v51 = vpop.f32.mrb[39].mxu1 }
 0x134   : > { %v689_v42 = vpop.f32.mrb[36].mxu0 }
 0x135   : > { %v703_v52 = vadd.f32 %v689_v42, %v568_v58  ;;  %v2338_v55 = vpop.f32.mrb[37].mxu0 }
 0x136   : > { %v692_v56 = vpop.f32.mrb[38].mxu0  ;;  %v1053_v60 = vpop.f32.mrb[40].mxu1 }
 0x137   : > { %v822_v33 = vadd.f32 %v808_v47, %v703_v52  ;;  %v2339_v59 = vpop.f32.mrb[39].mxu0  ;;  %v2400_v49 = vpop.f32.mrb[41].mxu1 }
 0x138   : > { %v1056_v61 = vpop.f32.mrb[42].mxu1 }
 0x139   : > { %v2401_v7 = vpop.f32.mrb[43].mxu1 }
 0x13c   : > { %v922_v2 = vpop.f32.mrb[40].mxu0 }
 0x13d   : > { %v960_v54 = vadd.f32 %v922_v2, %v814_v5  ;;  %v2374_v48 = vpop.f32.mrb[41].mxu0 }
 0x13e   : > { %v925_v4 = vpop.f32.mrb[42].mxu0  ;;  %v1061_v3 = vpop.f32.mrb[44].mxu1 }
 0x13f   : > { %v961_v53 = vadd.f32 %v925_v4, %v815_v13  ;;  %v1091_v62 = vadd.f32 %v1053_v60, %v960_v54  ;;  %v2375_v0 = vpop.f32.mrb[43].mxu0  ;;  %v2404_v57 = vpop.f32.mrb[45].mxu1 }
 0x140   : > { %v1064_v11 = vpop.f32.mrb[46].mxu1 }
 0x141   : > { %v1092_v6 = vadd.f32 %v1056_v61, %v961_v53  ;;  %v2405_v58 = vpop.f32.mrb[47].mxu1 }
 0x144   : > { %v930_v12 = vpop.f32.mrb[44].mxu0 }
 0x145   : > { %v962_v63 = vadd.f32 %v930_v12, %v816_v23  ;;  %v2378_v10 = vpop.f32.mrb[45].mxu0 }
 0x146   : > { %v933_v14 = vpop.f32.mrb[46].mxu0  ;;  %v1069_v21 = vpop.f32.mrb[48].mxu1 }
 0x147   : > { %v963_v15 = vadd.f32 %v933_v14, %v817_v17  ;;  %v1093_v16 = vadd.f32 %v1061_v3, %v962_v63  ;;  %v2379_v18 = vpop.f32.mrb[47].mxu0  ;;  %v2408_v19 = vpop.f32.mrb[49].mxu1 }
 0x148   : > { %v1072_v24 = vpop.f32.mrb[50].mxu1 }
 0x149   : > { %v1094_v5 = vadd.f32 %v1064_v11, %v963_v15  ;;  %v2409_v27 = vpop.f32.mrb[51].mxu1 }
 0x14c   : > { %v938_v13 = vpop.f32.mrb[48].mxu0 }
 0x14d   : > { %v964_v28 = vadd.f32 %v938_v13, %v818_v36  ;;  %v2382_v29 = vpop.f32.mrb[49].mxu0 }
 0x14e   : > { %v941_v22 = vpop.f32.mrb[50].mxu0  ;;  %v1077_v35 = vpop.f32.mrb[52].mxu1 }
 0x14f   : > { %v965_v31 = vadd.f32 %v941_v22, %v819_v30  ;;  %v1095_v25 = vadd.f32 %v1069_v21, %v964_v28  ;;  %v2383_v34 = vpop.f32.mrb[51].mxu0  ;;  %v2412_v37 = vpop.f32.mrb[53].mxu1 }
 0x150   : > { %v1080_v38 = vpop.f32.mrb[54].mxu1 }
 0x151   : > { %v1096_v23 = vadd.f32 %v1072_v24, %v965_v31  ;;  %v2413_v39 = vpop.f32.mrb[55].mxu1 }
 0x154   : > { %v946_v17 = vpop.f32.mrb[52].mxu0 }
 0x155   : > { %v966_v40 = vadd.f32 %v946_v17, %v820_v45  ;;  %v2386_v41 = vpop.f32.mrb[53].mxu0 }
 0x156   : > { %v949_v32 = vpop.f32.mrb[54].mxu0  ;;  %v1085_v9 = vpop.f32.mrb[56].mxu1 }
 0x157   : > { %v967_v43 = vadd.f32 %v949_v32, %v821_v26  ;;  %v1097_v44 = vadd.f32 %v1077_v35, %v966_v40  ;;  %v2387_v8 = vpop.f32.mrb[55].mxu0  ;;  %v2416_v46 = vpop.f32.mrb[57].mxu1 }
 0x158   : > { %v1088_v47 = vpop.f32.mrb[58].mxu1 }
 0x159   : > { %v1098_v36 = vadd.f32 %v1080_v38, %v967_v43  ;;  %v2417_v20 = vpop.f32.mrb[59].mxu1 }
 0x15c   : > { %v954_v30 = vpop.f32.mrb[56].mxu0 }
 0x15d   : > { %v968_v50 = vadd.f32 %v954_v30, %v822_v33  ;;  %v2390_v51 = vpop.f32.mrb[57].mxu0 }
 0x15e   : > { %v957_v42 = vpop.f32.mrb[58].mxu0  ;;  %v1318_v56 = vpop.f32.mrb[60].mxu1 }
 0x15f   : > { %v1099_v52 = vadd.f32 %v1085_v9, %v968_v50  ;;  %v2391_v55 = vpop.f32.mrb[59].mxu0  ;;  %v2452_v59 = vpop.f32.mrb[61].mxu1 }
 0x160   : > { %v1321_v60 = vpop.f32.mrb[62].mxu1 }
 0x161   : > { %v2453_v45 = vpop.f32.mrb[63].mxu1 }
 0x164   : > { %v1172_v49 = vpop.f32.mrb[60].mxu0 }
 0x165   : > { %v1210_v61 = vadd.f32 %v1172_v49, %v1091_v62  ;;  %v2426_v26 = vpop.f32.mrb[61].mxu0 }
 0x166   : > { %v1175_v7 = vpop.f32.mrb[62].mxu0  ;;  %v1326_v4 = vpop.f32.mrb[64].mxu1 }
 0x167   : > { %v1211_v2 = vadd.f32 %v1175_v7, %v1092_v6  ;;  %v1356_v54 = vadd.f32 %v1318_v56, %v1210_v61  ;;  %v2427_v48 = vpop.f32.mrb[63].mxu0  ;;  %v2456_v53 = vpop.f32.mrb[65].mxu1 }
 0x168   : > { %v1329_v3 = vpop.f32.mrb[66].mxu1 }
 0x169   : > { %v1357_v0 = vadd.f32 %v1321_v60, %v1211_v2  ;;  %v2457_v33 = vpop.f32.mrb[67].mxu1 }
 0x16c   : > { %v1180_v57 = vpop.f32.mrb[64].mxu0 }
 0x16d   : > { %v1212_v11 = vadd.f32 %v1180_v57, %v1093_v16  ;;  %v2430_v58 = vpop.f32.mrb[65].mxu0 }
 0x16e   : > { %v1183_v12 = vpop.f32.mrb[66].mxu0  ;;  %v1334_v15 = vpop.f32.mrb[68].mxu1 }
 0x16f   : > { %v1213_v63 = vadd.f32 %v1183_v12, %v1094_v5  ;;  %v1358_v10 = vadd.f32 %v1326_v4, %v1212_v11  ;;  %v2431_v14 = vpop.f32.mrb[67].mxu0  ;;  %v2460_v18 = vpop.f32.mrb[69].mxu1 }
 0x170   : > { %v1337_v21 = vpop.f32.mrb[70].mxu1 }
 0x171   : > { %v1359_v62 = vadd.f32 %v1329_v3, %v1213_v63  ;;  %v2461_v19 = vpop.f32.mrb[71].mxu1 }
 0x174   : > { %v1188_v6 = vpop.f32.mrb[68].mxu0 }
 0x175   : > { %v1214_v24 = vadd.f32 %v1188_v6, %v1095_v25  ;;  %v2434_v27 = vpop.f32.mrb[69].mxu0 }
 0x176   : > { %v1191_v13 = vpop.f32.mrb[70].mxu0  ;;  %v1342_v31 = vpop.f32.mrb[72].mxu1 }
 0x177   : > { %v1215_v28 = vadd.f32 %v1191_v13, %v1096_v23  ;;  %v1360_v29 = vadd.f32 %v1334_v15, %v1214_v24  ;;  %v2435_v22 = vpop.f32.mrb[71].mxu0  ;;  %v2464_v34 = vpop.f32.mrb[73].mxu1 }
 0x178   : > { %v1345_v35 = vpop.f32.mrb[74].mxu1 }
 0x179   : > { %v1361_v16 = vadd.f32 %v1337_v21, %v1215_v28  ;;  %v2465_v37 = vpop.f32.mrb[75].mxu1 }
 0x17c   : > { %v1196_v5 = vpop.f32.mrb[72].mxu0 }
 0x17d   : > { %v1216_v38 = vadd.f32 %v1196_v5, %v1097_v44  ;;  %v2438_v39 = vpop.f32.mrb[73].mxu0  ;;  %v2172_v44 = vld [vmem:[%s3377_s2] ss:$0 sm:$0xff] }
 0x17e   : > { %v1199_v17 = vpop.f32.mrb[74].mxu0  ;;  %v1350_v43 = vpop.f32.mrb[76].mxu1  ;;  %v1521_v39 = vld [vmem:[%s3156_s19] sm:$0xff] }
 0x17f   : > { %v1217_v40 = vadd.f32 %v1199_v17, %v1098_v36  ;;  %v1362_v41 = vadd.f32 %v1342_v31, %v1216_v38  ;;  %v2439_v32 = vpop.f32.mrb[75].mxu0  ;;  %v2468_v8 = vpop.f32.mrb[77].mxu1 }
 0x180   : > { %v1353_v9 = vpop.f32.mrb[78].mxu1  ;;  %v1523_v8 = vld [vmem:[%s3156_s19 + $0x10] sm:$0xff] }
 0x181   : > { %v1363_v25 = vadd.f32 %v1345_v35, %v1217_v40  ;;  %v2469_v46 = vpop.f32.mrb[79].mxu1  ;;  %v1522_v40 = vld [vmem:[%s3156_s19 + $0x8] sm:$0xff] }
 0x182   : > { %v1524_v46 = vld [vmem:[%s3156_s19 + $0x18] sm:$0xff] }
 0x184   : > { %v1204_v23 = vpop.f32.mrb[76].mxu0 }
 0x185   : > { %v1218_v47 = vadd.f32 %v1204_v23, %v1099_v52  ;;  %v2442_v20 = vpop.f32.mrb[77].mxu0 }
 0x186   : > { %v1207_v30 = vpop.f32.mrb[78].mxu0  ;;  %v1525_v20 = vld [vmem:[%s3156_s19 + $0x20] sm:$0xff] }
 0x187   : > { %v1364_v50 = vadd.f32 %v1350_v43, %v1218_v47  ;;  %v2443_v51 = vpop.f32.mrb[79].mxu0 }
 0x188   : > { %v1526_v51 = vld [vmem:[%s3156_s19 + $0x28] sm:$0xff] }
 0x18c   : > { %v1449_v42 = vpop.f32.mrb[80].mxu0 }
 0x18d   : > { %v1487_v55 = vadd.f32 %v1449_v42, %v1356_v54  ;;  %v2478_v36 = vpop.f32.mrb[81].mxu0 }
 0x18e   : > { %v1452_v56 = vpop.f32.mrb[82].mxu0 }
 0x18f   : > { %v1503_v59 = vadd.f32 %v2172_v44, %v1487_v55  ;;  %v1488_v60 = vadd.f32 %v1452_v56, %v1357_v0  ;;  %v2479_v45 = vpop.f32.mrb[83].mxu0  ;;  %v1527_v55 = vld [vmem:[%s3156_s19 + $0x30] sm:$0xff] }
 0x191   : > { %2571 = vtanh.f32 %v1503_v59  ;;  %v1504_v49 = vadd.f32 %v2172_v44, %v1488_v60  ;;  %v1528_v59 = vld [vmem:[%s3156_s19 + $0x38] sm:$0xff] }
 0x193   : > { %2573 = vtanh.f32 %v1504_v49  ;;  %v1529_v49 = vld [vmem:[%s3156_s19 + $0x40] sm:$0xff] }
 0x194   : > { %v1457_v61 = vpop.f32.mrb[84].mxu0 }
 0x195   : > { %v1489_v52 = vadd.f32 %v1457_v61, %v1358_v10  ;;  %v2482_v26 = vpop.f32.mrb[85].mxu0 }
 0x196   : > { %v1460_v7 = vpop.f32.mrb[86].mxu0 }
 0x197   : > { %v1505_v2 = vadd.f32 %v2172_v44, %v1489_v52  ;;  %v1490_v48 = vadd.f32 %v1460_v7, %v1359_v62  ;;  %v2483_v4 = vpop.f32.mrb[87].mxu0 }
 0x199   : > { %2575 = vtanh.f32 %v1505_v2  ;;  %v1506_v53 = vadd.f32 %v2172_v44, %v1490_v48 }
 0x19b   : > { %v3122_v3 = vpop.eup %2571  ;;  %2577 = vtanh.f32 %v1506_v53 }
 0x19c   : > { %1584 = vrot.lane.b32.xlu0 %v3122_v3, %s2635_s15  ;;  %v1465_v54 = vpop.f32.mrb[88].mxu0 }
 0x19d   : > { %v1491_v0 = vadd.f32 %v1465_v54, %v1360_v29  ;;  %v2486_v33 = vpop.f32.mrb[89].mxu0  ;;  %v3126_v11 = vpop.eup %2573 }
 0x19e   : > { %v1468_v57 = vpop.f32.mrb[90].mxu0 }
 0x19f   : > { %v1507_v58 = vadd.f32 %v2172_v44, %v1491_v0  ;;  %v1492_v12 = vadd.f32 %v1468_v57, %v1361_v16  ;;  %v2487_v63 = vpop.f32.mrb[91].mxu0 }
 0x1a0   : > { %1586 = vrot.lane.b32.xlu0 %v3126_v11, %s2635_s15 }
 0x1a1   : > { %2579 = vtanh.f32 %v1507_v58  ;;  %v1508_v10 = vadd.f32 %v2172_v44, %v1492_v12 }
 0x1a3   : > { %v3130_v14 = vpop.eup %2575  ;;  %2581 = vtanh.f32 %v1508_v10 }
 0x1a4   : > { %1588 = vrot.lane.b32.xlu1 %v3130_v14, %s2635_s15  ;;  %v1473_v15 = vpop.f32.mrb[92].mxu0 }
 0x1a5   : > { %v1493_v18 = vadd.f32 %v1473_v15, %v1362_v41  ;;  %v2490_v62 = vpop.f32.mrb[93].mxu0  ;;  %v3134_v19 = vpop.eup %2577 }
 0x1a6   : > { %v1476_v21 = vpop.f32.mrb[94].mxu0 }
 0x1a7   : > { %v1509_v6 = vadd.f32 %v2172_v44, %v1493_v18  ;;  %v1494_v24 = vadd.f32 %v1476_v21, %v1363_v25  ;;  %v2491_v27 = vpop.f32.mrb[95].mxu0 }
 0x1a8   : > { %1590 = vrot.lane.b32.xlu1 %v3134_v19, %s2635_s15 }
 0x1a9   : > { %2583 = vtanh.f32 %v1509_v6  ;;  %v1510_v13 = vadd.f32 %v2172_v44, %v1494_v24 }
 0x1ab   : > { %v3138_v28 = vpop.eup %2579  ;;  %2585 = vtanh.f32 %v1510_v13 }
 0x1ac   : > { %1592 = vrot.lane.b32.xlu0 %v3138_v28, %s2635_s15  ;;  %v1481_v29 = vpop.f32.mrb[96].mxu0 }
 0x1ad   : > { %v3142_v22 = vpop.eup %2581  ;;  %v1495_v31 = vadd.f32 %v1481_v29, %v1364_v50  ;;  %v2494_v34 = vpop.f32.mrb[97].mxu0 }
 0x1ae   : > { %1594 = vrot.lane.b32.xlu1 %v3142_v22, %s2635_s15  ;;  %v1484_v16 = vpop.f32.mrb[98].mxu0 }
 0x1af   : > { %v1511_v35 = vadd.f32 %v2172_v44, %v1495_v31  ;;  %v2495_v37 = vpop.f32.mrb[99].mxu0 }
 0x1b1   : > { %2587 = vtanh.f32 %v1511_v35 }
 0x1b3   : > { %v3147_v5 = vpop.eup %2583 }
 0x1b4   : > { %1596 = vrot.lane.b32.xlu0 %v3147_v5, %s2635_s15 }
 0x1b5   : > { %v3158_v38 = vpop.eup %2585 }
 0x1b6   : > { %1598 = vrot.lane.b32.xlu1 %v3158_v38, %s2635_s15 }
 0x1ba   : > { %1539 = vrot.lane.b32.xlu1 %v1521_v39, %s2636_s20 }
 0x1bb   : > { %v3164_v17 = vpop.eup %2587 }
 0x1bc   : > { %1600 = vrot.lane.b32.xlu0 %v3164_v17, %s2635_s15 }
 0x1c0   : > { %1541 = vrot.lane.b32.xlu0 %v1522_v40, %s2636_s20 }
 0x20e   : > { %v1585_v41 = vpop.permute.xlu0 %1584 }
 0x20f   : > { %v1611_v32 = vmul.f32 %v3122_v3, %v1585_v41 }
 0x211   : > { %1629 = vrot.lane.b32.xlu1 %v1611_v32, %s2636_s20 }
 0x212   : > { %v1587_v43 = vpop.permute.xlu0 %1586 }
 0x213   : > { %v1612_v25 = vmul.f32 %v3126_v11, %v1587_v43 }
 0x215   : > { %1543 = vrot.lane.b32.xlu1 %v1523_v8, %s2636_s20  ;;  %1631 = vrot.lane.b32.xlu0 %v1612_v25, %s2636_s20 }
 0x216   : > { %v1589_v9 = vpop.permute.xlu1 %1588 }
 0x217   : > { %v1613_v23 = vmul.f32 %v3130_v14, %v1589_v9 }
 0x219   : > { %1633 = vrot.lane.b32.xlu1 %v1613_v23, %s2636_s20  ;;  %1545 = vrot.lane.b32.xlu0 %v1524_v46, %s2636_s20 }
 0x21a   : > { %v1591_v47 = vpop.permute.xlu1 %1590 }
 0x21b   : > { %v1614_v30 = vmul.f32 %v3134_v19, %v1591_v47 }
 0x21d   : > { %1547 = vrot.lane.b32.xlu1 %v1525_v20, %s2636_s20  ;;  %1635 = vrot.lane.b32.xlu0 %v1614_v30, %s2636_s20 }
 0x21e   : > { %v1593_v50 = vpop.permute.xlu0 %1592 }
 0x21f   : > { %v1615_v42 = vmul.f32 %v3138_v28, %v1593_v50 }
 0x220   : > { %v1595_v44 = vpop.permute.xlu1 %1594 }
 0x221   : > { %1637 = vrot.lane.b32.xlu1 %v1615_v42, %s2636_s20  ;;  %1549 = vrot.lane.b32.xlu0 %v1526_v51, %s2636_s20  ;;  %v1616_v36 = vmul.f32 %v3142_v22, %v1595_v44 }
 0x225   : > { %1551 = vrot.lane.b32.xlu1 %v1527_v55, %s2636_s20  ;;  %1639 = vrot.lane.b32.xlu0 %v1616_v36, %s2636_s20  ;;  %v2569_v36 = vld [vmem:[%s3379_s4] sm:$0xff]  }
 0x226   : > { %v1597_v56 = vpop.permute.xlu0 %1596  ;;  %2497 = vmatpush3.bf16.msra.mxu1 %v2569_v36 }
 0x227   : > { %v1617_v60 = vmul.f32 %v3147_v5, %v1597_v56  ;;  %v2570_v56 = vld [vmem:[%s3379_s4 + $0x8] sm:$0xff]   ;;  %2498 = vmatprep.subr.bf16.mxu1 %v2633_v1 }
 0x228   : > { %v1599_v45 = vpop.permute.xlu1 %1598 }
 0x229   : > { %1641 = vrot.lane.b32.xlu1 %v1617_v60, %s2636_s20  ;;  %1553 = vrot.lane.b32.xlu0 %v1528_v59, %s2636_s20  ;;  %v1618_v61 = vmul.f32 %v3158_v38, %v1599_v45 }
 0x22a   : > { %2499 = vmatpush3.bf16.msra.mxu1 %v2570_v56 }
 0x22c   : > { %v1540_v7 = vpop.permute.xlu1 %1539 }
 0x22d   : > { %1555 = vrot.lane.b32.xlu1 %v1529_v49, %s2636_s20  ;;  %1643 = vrot.lane.b32.xlu0 %v1618_v61, %s2636_s20  ;;  %v1566_v2 = vmul.f32 %v3122_v3, %v1540_v7 }
 0x22e   : > { %v1601_v52 = vpop.permute.xlu0 %1600 }
 0x22f   : > { %v1619_v26 = vmul.f32 %v3164_v17, %v1601_v52 }
 0x231   : > { %1645 = vrot.lane.b32.xlu0 %v1619_v26, %s2636_s20 }
 0x232   : > { %v1542_v48 = vpop.permute.xlu0 %1541 }
 0x233   : > { %v1567_v54 = vmul.f32 %v3126_v11, %v1542_v48 }
 0x283   : > { %v1630_v4 = vpop.permute.xlu1 %1629 }
 0x284   : > { %v3203_v53 = vadd.f32 %v1630_v4, %v1566_v2 }
 0x286   : > { %2589 = vtanh.f32 %v3203_v53 }
 0x287   : > { %v1544_v0 = vpop.permute.xlu1 %1543  ;;  %v1632_v33 = vpop.permute.xlu0 %1631 }
 0x288   : > { %v3207_v57 = vadd.f32 %v1632_v33, %v1567_v54  ;;  %v1568_v58 = vmul.f32 %v3130_v14, %v1544_v0 }
 0x28a   : > { %2591 = vtanh.f32 %v3207_v57 }
 0x28b   : > { %v1634_v12 = vpop.permute.xlu1 %1633  ;;  %v1546_v63 = vpop.permute.xlu0 %1545 }
 0x28c   : > { %v3211_v10 = vadd.f32 %v1634_v12, %v1568_v58  ;;  %v1569_v15 = vmul.f32 %v3134_v19, %v1546_v63 }
 0x28e   : > { %2593 = vtanh.f32 %v3211_v10 }
 0x28f   : > { %v1548_v18 = vpop.permute.xlu1 %1547  ;;  %v1636_v62 = vpop.permute.xlu0 %1635 }
 0x290   : > { %v2590_v21 = vpop.eup %2589  ;;  %v3215_v6 = vadd.f32 %v1636_v62, %v1569_v15  ;;  %v1570_v24 = vmul.f32 %v3138_v28, %v1548_v18 }
 0x291   : > { %1683 = vrot.lane.b32.xlu1 %v2590_v21, %s2635_s15 }
 0x292   : > { %2595 = vtanh.f32 %v3215_v6 }
 0x293   : > { %v1638_v27 = vpop.permute.xlu1 %1637  ;;  %v1550_v13 = vpop.permute.xlu0 %1549 }
 0x294   : > { %v2592_v29 = vpop.eup %2591  ;;  %v3220_v31 = vadd.f32 %v1638_v27, %v1570_v24  ;;  %v1571_v34 = vmul.f32 %v3142_v22, %v1550_v13 }
 0x295   : > { %1685 = vrot.lane.b32.xlu0 %v2592_v29, %s2635_s15 }
 0x296   : > { %2597 = vtanh.f32 %v3220_v31 }
 0x297   : > { %v1552_v16 = vpop.permute.xlu1 %1551  ;;  %v1640_v35 = vpop.permute.xlu0 %1639 }
 0x298   : > { %v2594_v37 = vpop.eup %2593  ;;  %v3225_v39 = vadd.f32 %v1640_v35, %v1571_v34  ;;  %v1572_v40 = vmul.f32 %v3147_v5, %v1552_v16 }
 0x299   : > { %1687 = vrot.lane.b32.xlu1 %v2594_v37, %s2635_s15 }
 0x29a   : > { %2599 = vtanh.f32 %v3225_v39 }
 0x29b   : > { %v1642_v41 = vpop.permute.xlu1 %1641  ;;  %v1554_v32 = vpop.permute.xlu0 %1553 }
 0x29c   : > { %v2596_v43 = vpop.eup %2595  ;;  %v3230_v8 = vadd.f32 %v1642_v41, %v1572_v40  ;;  %v1573_v25 = vmul.f32 %v3158_v38, %v1554_v32 }
 0x29d   : > { %1689 = vrot.lane.b32.xlu0 %v2596_v43, %s2635_s15 }
 0x29e   : > { %2601 = vtanh.f32 %v3230_v8 }
 0x29f   : > { %v1556_v9 = vpop.permute.xlu1 %1555  ;;  %v1644_v46 = vpop.permute.xlu0 %1643 }
 0x2a0   : > { %v2598_v23 = vpop.eup %2597  ;;  %v1663_v47 = vadd.f32 %v1644_v46, %v1573_v25  ;;  %v1574_v20 = vmul.f32 %v3164_v17, %v1556_v9 }
 0x2a1   : > { %1691 = vrot.lane.b32.xlu1 %v2598_v23, %s2635_s15 }
 0x2a2   : > { %2603 = vtanh.f32 %v1663_v47 }
 0x2a3   : > { %v1646_v30 = vpop.permute.xlu0 %1645 }
 0x2a4   : > { %v2600_v50 = vpop.eup %2599  ;;  %v1664_v51 = vadd.f32 %v1646_v30, %v1574_v20 }
 0x2a5   : > { %1693 = vrot.lane.b32.xlu0 %v2600_v50, %s2635_s15 }
 0x2a6   : > { %2605 = vtanh.f32 %v1664_v51 }
 0x2a8   : > { %v2602_v42 = vpop.eup %2601 }
 0x2a9   : > { %1695 = vrot.lane.b32.xlu1 %v2602_v42, %s2635_s15 }
 0x2ac   : > { %v2604_v44 = vpop.eup %2603 }
 0x2ad   : > { %1697 = vrot.lane.b32.xlu0 %v2604_v44, %s2635_s15 }
 0x2b0   : > { %v2606_v55 = vpop.eup %2605 }
 0x2b1   : > { %1699 = vrot.lane.b32.xlu1 %v2606_v55, %s2635_s15 }
 0x303   : > { %v1684_v59 = vpop.permute.xlu1 %1683 }
 0x304   : > { %v1710_v45 = vmul.f32 %v3122_v3, %v1684_v59 }
 0x307   : > { %v1686_v60 = vpop.permute.xlu0 %1685 }
 0x308   : > { %v1711_v49 = vmul.f32 %v3126_v11, %v1686_v60 }
 0x30a   : > { %v1719_v61 = vpack.c.bf16 %v1711_v49, %v1710_v45 }
 0x30b   : > { %v1688_v52 = vpop.permute.xlu1 %1687 }
 0x30c   : > { %1740 = vrot.lane.b32.xlu0 %v1719_v61, %s2636_s20  ;;  %v1712_v7 = vmul.f32 %v3130_v14, %v1688_v52 }
 0x30f   : > { %v1690_v26 = vpop.permute.xlu0 %1689 }
 0x310   : > { %v1713_v2 = vmul.f32 %v3134_v19, %v1690_v26 }
 0x312   : > { %v1720_v48 = vpack.c.bf16 %v1713_v2, %v1712_v7 }
 0x313   : > { %v1692_v4 = vpop.permute.xlu1 %1691 }
 0x314   : > { %1742 = vrot.lane.b32.xlu1 %v1720_v48, %s2636_s20  ;;  %v1714_v0 = vmul.f32 %v3138_v28, %v1692_v4 }
 0x317   : > { %v1694_v54 = vpop.permute.xlu0 %1693 }
 0x318   : > { %v1715_v3 = vmul.f32 %v3142_v22, %v1694_v54 }
 0x31a   : > { %v1721_v33 = vpack.c.bf16 %v1715_v3, %v1714_v0 }
 0x31b   : > { %v1696_v11 = vpop.permute.xlu1 %1695 }
 0x31c   : > { %1744 = vrot.lane.b32.xlu0 %v1721_v33, %s2636_s20  ;;  %v1716_v12 = vmul.f32 %v3147_v5, %v1696_v11 }
 0x31f   : > { %v1698_v58 = vpop.permute.xlu0 %1697 }
 0x320   : > { %v1717_v14 = vmul.f32 %v3158_v38, %v1698_v58 }
 0x322   : > { %v1722_v63 = vpack.c.bf16 %v1717_v14, %v1716_v12 }
 0x323   : > { %v1700_v19 = vpop.permute.xlu1 %1699 }
 0x324   : > { %v1718_v15 = vmul.f32 %v3164_v17, %v1700_v19  ;;  %1746 = vrot.lane.b32.xlu1 %v1722_v63, %s2636_s20 }
 0x326   : > { %v1723_v18 = vpack.c.bf16 %v1718_v15, %v1718_v15 }
 0x328   : > { %1868 = vrot.lane.b32.xlu1 %v1710_v45, %s2635_s15  ;;  %1748 = vrot.lane.b32.xlu0 %v1723_v18, %s2636_s20 }
 0x32c   : > { %1872 = vrot.lane.b32.xlu1 %v1712_v7, %s2635_s15  ;;  %1870 = vrot.lane.b32.xlu0 %v1711_v49, %s2635_s15 }
 0x330   : > { %1876 = vrot.lane.b32.xlu1 %v1714_v0, %s2635_s15  ;;  %1874 = vrot.lane.b32.xlu0 %v1713_v2, %s2635_s15 }
 0x334   : > { %1880 = vrot.lane.b32.xlu1 %v1716_v12, %s2635_s15  ;;  %1878 = vrot.lane.b32.xlu0 %v1715_v3, %s2635_s15 }
 0x338   : > { %1884 = vrot.lane.b32.xlu1 %v1718_v15, %s2635_s15  ;;  %1882 = vrot.lane.b32.xlu0 %v1717_v14, %s2635_s15 }
 0x33c   : > { %1906 = vrot.lane.b32.xlu1 %v3207_v57, %s2636_s20  ;;  %1904 = vrot.lane.b32.xlu0 %v3203_v53, %s2636_s20 }
 0x340   : > { %1910 = vrot.lane.b32.xlu1 %v3215_v6, %s2636_s20  ;;  %1908 = vrot.lane.b32.xlu0 %v3211_v10, %s2636_s20  ;;  %v3305_v6 = vld [vmem:[%s3380_s5] ss:$0 sm:$0xff] }
 0x344   : > { %1914 = vrot.lane.b32.xlu1 %v3225_v39, %s2636_s20  ;;  %1912 = vrot.lane.b32.xlu0 %v3220_v31, %s2636_s20 }
 0x348   : > { %1918 = vrot.lane.b32.xlu1 %v1663_v47, %s2636_s20  ;;  %1916 = vrot.lane.b32.xlu0 %v3230_v8, %s2636_s20 }
 0x34c   : > { %1920 = vrot.lane.b32.xlu0 %v1664_v51, %s2636_s20 }
 0x37e   : > { %v1741_v28 = vpop.permute.xlu0 %1740 }
 0x37f   : > { %2501 = vmatmul.mubr.msk.bf16.vlgmr.msra.gmra.mrb[80].mxu1 %vm1762_vm8, %v1741_v28 }
 0x380   : > { %2504 = vmatprep.mubr.msk.bf16.mxu1 %vm2634_vm0, %v2633_v1 }
 0x386   : > { %v1743_v22 = vpop.permute.xlu1 %1742 }
 0x387   : > { %2505 = vmatmul.mubr.msk.bf16.gmra.mrb[84].mxu1 %vm1762_vm8, %v1743_v22 }
 0x388   : > { %2508 = vmatprep.mubr.msk.bf16.mxu1 %vm2634_vm0, %v2633_v1 }
 0x38e   : > { %v1745_v5 = vpop.permute.xlu0 %1744 }
 0x38f   : > { %2509 = vmatmul.mubr.msk.bf16.gmra.mrb[88].mxu1 %vm1762_vm8, %v1745_v5 }
 0x390   : > { %2512 = vmatprep.mubr.msk.bf16.mxu1 %vm2634_vm0, %v2633_v1 }
 0x396   : > { %v1747_v38 = vpop.permute.xlu1 %1746 }
 0x397   : > { %2513 = vmatmul.mubr.msk.bf16.gmra.mrb[92].mxu1 %vm1762_vm8, %v1747_v38 }
 0x398   : > { %2516 = vmatprep.mubr.msk.bf16.mxu1 %vm2634_vm0, %v2633_v1 }
 0x39a   : > { %v1749_v17 = vpop.permute.xlu0 %1748  ;;  %v1869_v53 = vpop.permute.xlu1 %1868 }
 0x39e   : > { %v1871_v57 = vpop.permute.xlu0 %1870  ;;  %v1873_v10 = vpop.permute.xlu1 %1872 }
 0x39f   : > { %2517 = vmatmul.mubr.msk.bf16.gmra.mrb[96].mxu1 %vm1762_vm8, %v1749_v17 }
 0x3a2   : > { %v1875_v62 = vpop.permute.xlu0 %1874  ;;  %v3300_v21 = vpop.permute.xlu1 %1876 }
 0x3a6   : > { %v3308_v29 = vpop.permute.xlu0 %1878  ;;  %v3311_v16 = vpop.permute.xlu1 %1880 }
 0x3aa   : > { %v3313_v35 = vpop.permute.xlu0 %1882  ;;  %v3316_v41 = vpop.permute.xlu1 %1884 }
 0x3ae   : > { %v1905_v9 = vpop.permute.xlu0 %1904  ;;  %v1907_v20 = vpop.permute.xlu1 %1906 }
 0x3b2   : > { %v1909_v49 = vpop.permute.xlu0 %1908  ;;  %v1911_v7 = vpop.permute.xlu1 %1910 }
 0x3b6   : > { %v1913_v63 = vpop.permute.xlu0 %1912  ;;  %v1915_v28 = vpop.permute.xlu1 %1914 }
 0x452   : > { %v1812_v24 = vpop.f32.mrb[80].mxu1 }
 0x453   : > { %v1813_v27 = vadd.f32 %v3305_v6, %v1812_v24  ;;  %v2502_v13 = vpop.f32.mrb[81].mxu1 }
 0x454   : > { %v1815_v1 = vpop.f32.mrb[82].mxu1 }
 0x455   : > { %2607 = vtanh.f32 %v1813_v27  ;;  %v1816_v31 = vadd.f32 %v3305_v6, %v1815_v1  ;;  %v2503_v34 = vpop.f32.mrb[83].mxu1  ;;  %v1917_v27 = vpop.permute.xlu0 %1916 }
 0x457   : > { %2609 = vtanh.f32 %v1816_v31  ;;  %v1919_v31 = vpop.permute.xlu1 %1918 }
 0x45a   : > { %v1820_v37 = vpop.f32.mrb[84].mxu1 }
 0x45b   : > { %v1821_v39 = vadd.f32 %v3305_v6, %v1820_v37  ;;  %v2506_v40 = vpop.f32.mrb[85].mxu1 }
 0x45c   : > { %v1823_v32 = vpop.f32.mrb[86].mxu1 }
 0x45d   : > { %2611 = vtanh.f32 %v1821_v39  ;;  %v1824_v43 = vadd.f32 %v3305_v6, %v1823_v32  ;;  %v2507_v8 = vpop.f32.mrb[87].mxu1  ;;  %v1921_v32 = vpop.permute.xlu0 %1920 }
 0x45f   : > { %v2608_v25 = vpop.eup %2607  ;;  %2613 = vtanh.f32 %v1824_v43 }
 0x460   : > { %v1931_v46 = vsel %vm1762_vm8, %v2608_v25, %v1869_v53 }
 0x461   : > { %v2610_v23 = vpop.eup %2609  ;;  %v1941_v47 = vsel %vm1940_vm9, %v1931_v46, %v1905_v9 }
 0x462   : > { %v1951_v30 = vsel %vm1950_vm10, %v1941_v47, 0.0  ;;  %v1932_v50 = vsel %vm1762_vm8, %v2610_v23, %v1871_v57  ;;  %v1828_v51 = vpop.f32.mrb[88].mxu1 }
 0x463   : > { %1960 = vst [vmem:[%s3324_s7] sm:$0xff] %v1951_v30  ;;  %v1942_v42 = vsel %vm1940_vm9, %v1932_v50, %v1907_v20  ;;  %v1829_v44 = vadd.f32 %v3305_v6, %v1828_v51  ;;  %v2510_v55 = vpop.f32.mrb[89].mxu1 }
 0x464   : > { %v1952_v36 = vsel %vm1950_vm10, %v1942_v42, 0.0  ;;  %v1831_v56 = vpop.f32.mrb[90].mxu1 }
 0x465   : > { %1961 = vst [vmem:[%s3324_s7 + $0x8] sm:$0xff] %v1952_v36  ;;  %2615 = vtanh.f32 %v1829_v44  ;;  %v1832_v59 = vadd.f32 %v3305_v6, %v1831_v56  ;;  %v2511_v60 = vpop.f32.mrb[91].mxu1 }
 0x467   : > { %v2612_v45 = vpop.eup %2611  ;;  %2617 = vtanh.f32 %v1832_v59 }
 0x468   : > { %v1933_v61 = vsel %vm1762_vm8, %v2612_v45, %v1873_v10 }
 0x469   : > { %v2614_v52 = vpop.eup %2613  ;;  %v1943_v26 = vsel %vm1940_vm9, %v1933_v61, %v1909_v49 }
 0x46a   : > { %v1953_v2 = vsel %vm1950_vm10, %v1943_v26, 0.0  ;;  %v1934_v48 = vsel %vm1762_vm8, %v2614_v52, %v1875_v62  ;;  %v1836_v4 = vpop.f32.mrb[92].mxu1 }
 0x46b   : > { %1962 = vst [vmem:[%s3324_s7 + $0x10] sm:$0xff] %v1953_v2  ;;  %v1944_v54 = vsel %vm1940_vm9, %v1934_v48, %v1911_v7  ;;  %v1837_v0 = vadd.f32 %v3305_v6, %v1836_v4  ;;  %v2514_v3 = vpop.f32.mrb[93].mxu1 }
 0x46c   : > { %v1954_v33 = vsel %vm1950_vm10, %v1944_v54, 0.0  ;;  %v1839_v11 = vpop.f32.mrb[94].mxu1 }
 0x46d   : > { %1963 = vst [vmem:[%s3324_s7 + $0x18] sm:$0xff] %v1954_v33  ;;  %2619 = vtanh.f32 %v1837_v0  ;;  %v1840_v58 = vadd.f32 %v3305_v6, %v1839_v11  ;;  %v2515_v12 = vpop.f32.mrb[95].mxu1 }
 0x46f   : > { %v2616_v14 = vpop.eup %2615  ;;  %2621 = vtanh.f32 %v1840_v58 }
 0x470   : > { %v1935_v19 = vsel %vm1762_vm8, %v2616_v14, %v3300_v21 }
 0x471   : > { %v2618_v15 = vpop.eup %2617  ;;  %v1945_v18 = vsel %vm1940_vm9, %v1935_v19, %v1913_v63 }
 0x472   : > { %v1955_v22 = vsel %vm1950_vm10, %v1945_v18, 0.0  ;;  %v1936_v5 = vsel %vm1762_vm8, %v2618_v15, %v3308_v29  ;;  %v1844_v38 = vpop.f32.mrb[96].mxu1 }
 0x473   : > { %1964 = vst [vmem:[%s3324_s7 + $0x20] sm:$0xff] %v1955_v22  ;;  %v1946_v17 = vsel %vm1940_vm9, %v1936_v5, %v1915_v28  ;;  %v1845_v53 = vadd.f32 %v3305_v6, %v1844_v38  ;;  %v2518_v57 = vpop.f32.mrb[97].mxu1 }
 0x474   : > { %v1956_v10 = vsel %vm1950_vm10, %v1946_v17, 0.0  ;;  %v1847_v62 = vpop.f32.mrb[98].mxu1 }
 0x475   : > { %1965 = vst [vmem:[%s3324_s7 + $0x28] sm:$0xff] %v1956_v10  ;;  %2623 = vtanh.f32 %v1845_v53  ;;  %v2519_v21 = vpop.f32.mrb[99].mxu1 }
 0x477   : > { %v2620_v24 = vpop.eup %2619 }
 0x478   : > { %v1937_v13 = vsel %vm1762_vm8, %v2620_v24, %v3311_v16 }
 0x479   : > { %v2622_v29 = vpop.eup %2621  ;;  %v1947_v1 = vsel %vm1940_vm9, %v1937_v13, %v1917_v27 }
 0x47a   : > { %v1957_v6 = vsel %vm1950_vm10, %v1947_v1, 0.0  ;;  %v1938_v34 = vsel %vm1762_vm8, %v2622_v29, %v3313_v35 }
 0x47b   : > { %1966 = vst [vmem:[%s3324_s7 + $0x30] sm:$0xff] %v1957_v6  ;;  %v1948_v37 = vsel %vm1940_vm9, %v1938_v34, %v1919_v31 }
 0x47c   : > { %v1958_v39 = vsel %vm1950_vm10, %v1948_v37, 0.0 }
 0x47d   : > { %1967 = vst [vmem:[%s3324_s7 + $0x38] sm:$0xff] %v1958_v39 }
 0x47f   : > { %v2624_v40 = vpop.eup %2623 }
 0x480   : > { %v1939_v16 = vsel %vm1762_vm8, %v2624_v40, %v3316_v41 }
 0x481   : > { %v1949_v43 = vsel %vm1940_vm9, %v1939_v16, %v1921_v32 }
 0x482   : > { %v1959_v8 = vsel %vm1950_vm10, %v1949_v43, 0.0 }
 0x483   : > { %1968 = vst [vmem:[%s3324_s7 + $0x40] sm:$0xff] %v1959_v8 }
 0x484 PF: > { %s16_s21 = sadd.s32 1, %s2631_s21  }
 0x485   : > { %p13_p4 = scmp.ge.s32.totalorder %s16_s21, 10  }
 0x487   :  { %15 = sbr.rel (!%p13_p4) target bundleno = 1 (0x1), region = 85 }

</bundles_post_ra>
